<compile_context>
chip_gen: v6e
topology: v6e:2x2x1
jax: 0.10.0
libtpu: 0.0.40
codegen_flags: <defaults>
</compile_context>

<pallas_src>
import jax
import jax.numpy as jnp
from jax import lax
from jax.experimental import pallas as pl
from jax.experimental.pallas import tpu as pltpu


def _ae_kernel(x_ref, w1_ref, b1_ref, w2_ref, b2_ref, w3_ref, b3_ref,
               w4_ref, b4_ref, lamb_ref, rec_ref, lat_ref):
    x = x_ref[...].astype(jnp.bfloat16)                          # (TB, D_in) bf16

    # ---- encoder: latent = enfco(tanh(enfc1(x))) ----
    h1 = jnp.tanh(
        jnp.dot(x, w1_ref[...], preferred_element_type=jnp.float32) + b1_ref[...])
    latent = (jnp.dot(h1.astype(jnp.bfloat16), w2_ref[...],
                      preferred_element_type=jnp.float32) + b2_ref[...])

    # ---- soft_thres(latent, |lamb|) ----
    # latent[:, :half] is the real part, latent[:, half:] the imaginary part.
    alamb = jnp.abs(lamb_ref[0])                                 # scalar |lamb| (SMEM)
    half = latent.shape[1] // 2
    re = latent[:, :half]
    im = latent[:, half:]
    mag2 = re * re + im * im
    nonzero = mag2 > 0.0
    inv_mag = lax.rsqrt(jnp.where(nonzero, mag2, 1.0))           # EUP, not VPU div
    # relu(|z| - |lamb|) / |z| == max(1 - |lamb|/|z|, 0) for |z| > 0; the 0/0
    # case (|z| == 0) is NaN in torch and explicitly zeroed there -> zero here.
    scale = jnp.where(nonzero, jnp.maximum(1.0 - alamb * inv_mag, 0.0), 0.0)
    re_s = re * scale
    im_s = im * scale

    # Latent output: direct lane-aligned half-writes (no concat temp needed
    # for the store).
    lat_ref[:, :half] = re_s
    lat_ref[:, half:] = im_s

    # ---- decoder: reconstructed = defco(tanh(defc1(latent_sparse))) ----
    # Feed the decoder from registers (both halves are 128-lane aligned, so the
    # concat is pure vreg placement), not from a lat_ref read-back.
    lat_sparse = jnp.concatenate([re_s, im_s], axis=1).astype(jnp.bfloat16)
    h2 = jnp.tanh(
        jnp.dot(lat_sparse, w3_ref[...], preferred_element_type=jnp.float32)
        + b3_ref[...])
    rec_ref[...] = (jnp.dot(h2.astype(jnp.bfloat16), w4_ref[...],
                            preferred_element_type=jnp.float32) + b4_ref[...])


def sparse_autoencoder0(x, params, block_b=256):
    """Forward pass. x: (B, input_dim). Returns (reconstructed, latent_sparse)."""
    B, D_in = x.shape
    w1, b1 = params["w1"], params["b1"]   # (D_in, H) bf16, (1, H) f32
    w2, b2 = params["w2"], params["b2"]   # (H, D_in) bf16, (1, D_in) f32
    w3, b3 = params["w3"], params["b3"]   # (D_in, H) bf16, (1, H) f32
    w4, b4 = params["w4"], params["b4"]   # (H, D_out) bf16, (1, D_out) f32
    lamb = params["lamb"]                 # (1,) f32
    H = w1.shape[1]
    D_out = w4.shape[1]

    # Clamp the batch tile to the batch (small demo batches) but keep it a
    # multiple of 8 (sublane granularity).  No padding: if B is not a multiple
    # of block_b, Pallas' masked edge block handles the ragged tail (rows are
    # independent, garbage tail rows are never written back).
    block_b = max(8, min(block_b, ((B + 7) // 8) * 8))
    grid_b = pl.cdiv(B, block_b)

    # Loop-invariant weights/biases: constant index_map -> DMA'd once.
    def const_spec(shape):
        return pl.BlockSpec(shape, lambda i: (0, 0))

    return pl.pallas_call(
        _ae_kernel,
        out_shape=(
            jax.ShapeDtypeStruct((B, D_out), jnp.float32),
            jax.ShapeDtypeStruct((B, D_in), jnp.float32),
        ),
        grid_spec=pltpu.PrefetchScalarGridSpec(
            num_scalar_prefetch=0,
            grid=(grid_b,),
            in_specs=[
                pl.BlockSpec((block_b, D_in), lambda i: (i, 0)),    # x
                const_spec((D_in, H)), const_spec((1, H)),          # enfc1
                const_spec((H, D_in)), const_spec((1, D_in)),       # enfco
                const_spec((D_in, H)), const_spec((1, H)),          # defc1
                const_spec((H, D_out)), const_spec((1, D_out)),     # defco
                pl.BlockSpec(memory_space=pltpu.MemorySpace.SMEM),  # lamb
            ],
            out_specs=[
                pl.BlockSpec((block_b, D_out), lambda i: (i, 0)),
                pl.BlockSpec((block_b, D_in), lambda i: (i, 0)),
            ],
        ),
        compiler_params=pltpu.CompilerParams(
            dimension_semantics=("parallel",),
            # Real footprint is small (~2 MiB at block_b=128, ~4 MiB at 512:
            # weights ~0.6 MiB double-buffered + x/rec/lat tiles + temps).
            # 32 MiB is generous headroom on every generation (v7x: 64 MiB
            # physical) and is NOT the tiling constraint.
            vmem_limit_bytes=32 * 1024 * 1024,
        ),
    )(x, w1, b1, w2, b2, w3, b3, w4, b4, lamb)


def init_params(key, input_dim, hidden_dim, output_dim=None):
    """Deterministic init mimicking nn.Linear's U(-1/sqrt(fan_in), 1/sqrt(fan_in)).
    Weights stored pre-transposed as (in, out) in bf16 (MXU operands); biases
    and lamb stay f32."""
    if output_dim is None:
        output_dim = input_dim
    ks = jax.random.split(key, 8)

    def linear(kw, kb, fan_in, fan_out):
        bound = 1.0 / jnp.sqrt(jnp.float32(fan_in))
        w = jax.random.uniform(kw, (fan_in, fan_out), jnp.float32, -bound, bound)
        b = jax.random.uniform(kb, (1, fan_out), jnp.float32, -bound, bound)
        return w.astype(jnp.bfloat16), b

    w1, b1 = linear(ks[0], ks[1], input_dim, hidden_dim)    # enfc1
    w2, b2 = linear(ks[2], ks[3], hidden_dim, input_dim)    # enfco
    w3, b3 = linear(ks[4], ks[5], input_dim, hidden_dim)    # defc1
    w4, b4 = linear(ks[6], ks[7], hidden_dim, output_dim)   # defco
    return dict(w1=w1, b1=b1, w2=w2, b2=b2, w3=w3, b3=b3, w4=w4, b4=b4,
                lamb=jnp.full((1,), 0.01, jnp.float32))


def _reference(x, p):
    """Pure-JAX reference with the same precision recipe (bf16 operands,
    f32 accumulation, f32 element-wise math)."""
    def dot_bf16(a, w):
        return jnp.dot(a.astype(jnp.bfloat16), w, preferred_element_type=jnp.float32)

    h1 = jnp.tanh(dot_bf16(x, p["w1"]) + p["b1"])
    latent = dot_bf16(h1, p["w2"]) + p["b2"]
    lamb = jnp.abs(p["lamb"][0])
    half = latent.shape[1] // 2
    re, im = latent[:, :half], latent[:, half:]
    mag = jnp.sqrt(re * re + im * im)
    safe = jnp.where(mag > 0, mag, 1.0)
    scale = jnp.where(mag > 0, jnp.maximum(mag - lamb, 0.0) / safe, 0.0)
    lat = jnp.concatenate([re * scale, im * scale], axis=1)
    h2 = jnp.tanh(dot_bf16(lat, p["w3"]) + p["b3"])
    rec = dot_bf16(h2, p["w4"]) + p["b4"]
    return rec, lat


if __name__ == "__main__":
    key = jax.random.PRNGKey(0)
    k_x, k_p = jax.random.split(key)

    # Small demo shapes consistent with the module (input_dim must be even for
    # soft_thres's real/imag split).  B is a multiple of block_b, so the grid
    # length is 2 (both v7x TensorCores get a step) and no ragged tail is hit.
    B, INPUT_DIM, HIDDEN_DIM = 256, 256, 128
    x = jax.random.normal(k_x, (B, INPUT_DIM), jnp.float32)
    params = init_params(k_p, INPUT_DIM, HIDDEN_DIM)

    rec, lat = sparse_autoencoder0(x, params, block_b=128)
    jax.block_until_ready((rec, lat))

    rec_exp, lat_exp = _reference(x, params)
    assert rec.shape == (B, INPUT_DIM) and lat.shape == (B, INPUT_DIM)
    assert jnp.allclose(rec, rec_exp, atol=1e-2, rtol=1e-2), \
        float(jnp.max(jnp.abs(rec - rec_exp)))
    assert jnp.allclose(lat, lat_exp, atol=1e-2, rtol=1e-2), \
        float(jnp.max(jnp.abs(lat - lat_exp)))

    print("KERNEL_OK")
</pallas_src>

<mosaic_0001>
module attributes {stable_mosaic.version = 11 : i64} {
  func.func @_ae_kernel(%arg0: i32, %arg1: memref<128x256xf32, #tpu.memory_space<vmem>>, %arg2: memref<256x128xbf16, #tpu.memory_space<vmem>>, %arg3: memref<1x128xf32, #tpu.memory_space<vmem>>, %arg4: memref<128x256xbf16, #tpu.memory_space<vmem>>, %arg5: memref<1x256xf32, #tpu.memory_space<vmem>>, %arg6: memref<256x128xbf16, #tpu.memory_space<vmem>>, %arg7: memref<1x128xf32, #tpu.memory_space<vmem>>, %arg8: memref<128x256xbf16, #tpu.memory_space<vmem>>, %arg9: memref<1x256xf32, #tpu.memory_space<vmem>>, %arg10: memref<1xf32, #tpu.memory_space<smem>>, %arg11: memref<128x256xf32, #tpu.memory_space<vmem>>, %arg12: memref<128x256xf32, #tpu.memory_space<vmem>>) attributes {dimension_semantics = [#tpu.dimension_semantics<parallel>], iteration_bounds = array<i64: 2>, scalar_prefetch = 0 : i64, scratch_operands = 0 : i64, tpu.core_type = #tpu.core_type<tc>, window_params = [{transform_indices = @transform_0, window_bounds = array<i64: 128, 256>}, {pipeline_mode = #tpu.pipeline_mode<synchronous>, transform_indices = @transform_1, window_bounds = array<i64: 256, 128>}, {pipeline_mode = #tpu.pipeline_mode<synchronous>, transform_indices = @transform_2, window_bounds = array<i64: 1, 128>}, {pipeline_mode = #tpu.pipeline_mode<synchronous>, transform_indices = @transform_3, window_bounds = array<i64: 128, 256>}, {pipeline_mode = #tpu.pipeline_mode<synchronous>, transform_indices = @transform_4, window_bounds = array<i64: 1, 256>}, {pipeline_mode = #tpu.pipeline_mode<synchronous>, transform_indices = @transform_5, window_bounds = array<i64: 256, 128>}, {pipeline_mode = #tpu.pipeline_mode<synchronous>, transform_indices = @transform_6, window_bounds = array<i64: 1, 128>}, {pipeline_mode = #tpu.pipeline_mode<synchronous>, transform_indices = @transform_7, window_bounds = array<i64: 128, 256>}, {pipeline_mode = #tpu.pipeline_mode<synchronous>, transform_indices = @transform_8, window_bounds = array<i64: 1, 256>}, {transform_indices = @transform_9, window_bounds = array<i64: 1>}, {transform_indices = @transform_10, window_bounds = array<i64: 128, 256>}, {transform_indices = @transform_11, window_bounds = array<i64: 128, 256>}]} {
    %c0 = arith.constant 0 : index
    %c0_0 = arith.constant 0 : index
    %0 = vector.load %arg1[%c0, %c0_0] : memref<128x256xf32, #tpu.memory_space<vmem>>, vector<128x256xf32>
    %1 = arith.truncf %0 : vector<128x256xf32> to vector<128x256xbf16>
    %c0_1 = arith.constant 0 : index
    %c0_2 = arith.constant 0 : index
    %2 = vector.load %arg2[%c0_1, %c0_2] : memref<256x128xbf16, #tpu.memory_space<vmem>>, vector<256x128xbf16>
    %cst = arith.constant dense<0.000000e+00> : vector<128x128xf32>
    %3 = tpu.matmul %1, %2, %cst {dimension_numbers = #tpu.dot_dimension_numbers<[1], [0], [0], [1], [0, 0, 1, 1], [], []>} : vector<128x256xbf16>, vector<256x128xbf16>, vector<128x128xf32> -> vector<128x128xf32>
    %c0_3 = arith.constant 0 : index
    %c0_4 = arith.constant 0 : index
    %4 = vector.load %arg3[%c0_3, %c0_4] : memref<1x128xf32, #tpu.memory_space<vmem>>, vector<1x128xf32>
    %5 = vector.broadcast %4 : vector<1x128xf32> to vector<128x128xf32>
    %6 = arith.addf %3, %5 : vector<128x128xf32>
    %7 = math.tanh %6 : vector<128x128xf32>
    %8 = arith.truncf %7 : vector<128x128xf32> to vector<128x128xbf16>
    %c0_5 = arith.constant 0 : index
    %c0_6 = arith.constant 0 : index
    %9 = vector.load %arg4[%c0_5, %c0_6] : memref<128x256xbf16, #tpu.memory_space<vmem>>, vector<128x256xbf16>
    %cst_7 = arith.constant dense<0.000000e+00> : vector<128x256xf32>
    %10 = tpu.matmul %8, %9, %cst_7 {dimension_numbers = #tpu.dot_dimension_numbers<[1], [0], [0], [1], [0, 0, 1, 1], [], []>} : vector<128x128xbf16>, vector<128x256xbf16>, vector<128x256xf32> -> vector<128x256xf32>
    %c0_8 = arith.constant 0 : index
    %c0_9 = arith.constant 0 : index
    %11 = vector.load %arg5[%c0_8, %c0_9] : memref<1x256xf32, #tpu.memory_space<vmem>>, vector<1x256xf32>
    %12 = vector.broadcast %11 : vector<1x256xf32> to vector<128x256xf32>
    %13 = arith.addf %10, %12 : vector<128x256xf32>
    %c0_10 = arith.constant 0 : index
    %14 = memref.load %arg10[%c0_10] : memref<1xf32, #tpu.memory_space<smem>>
    %15 = math.absf %14 : f32
    %16 = vector.extract_strided_slice %13 {offsets = [0, 0], sizes = [128, 128], strides = [1, 1]} : vector<128x256xf32> to vector<128x128xf32>
    %17 = vector.extract_strided_slice %13 {offsets = [0, 128], sizes = [128, 128], strides = [1, 1]} : vector<128x256xf32> to vector<128x128xf32>
    %18 = arith.mulf %16, %16 : vector<128x128xf32>
    %19 = arith.mulf %17, %17 : vector<128x128xf32>
    %20 = arith.addf %18, %19 : vector<128x128xf32>
    %cst_11 = arith.constant 0.000000e+00 : f32
    %21 = vector.broadcast %cst_11 : f32 to vector<128x128xf32>
    %22 = arith.cmpf ogt, %20, %21 : vector<128x128xf32>
    %cst_12 = arith.constant 1.000000e+00 : f32
    %23 = vector.broadcast %cst_12 : f32 to vector<128x128xf32>
    %24 = arith.select %22, %20, %23 : vector<128x128xi1>, vector<128x128xf32>
    %25 = math.rsqrt %24 : vector<128x128xf32>
    %26 = vector.broadcast %15 : f32 to vector<128x128xf32>
    %27 = arith.mulf %26, %25 : vector<128x128xf32>
    %cst_13 = arith.constant 1.000000e+00 : f32
    %28 = vector.broadcast %cst_13 : f32 to vector<128x128xf32>
    %29 = arith.subf %28, %27 : vector<128x128xf32>
    %cst_14 = arith.constant 0.000000e+00 : f32
    %30 = vector.broadcast %cst_14 : f32 to vector<128x128xf32>
    %31 = arith.maximumf %29, %30 : vector<128x128xf32>
    %cst_15 = arith.constant 0.000000e+00 : f32
    %32 = vector.broadcast %cst_15 : f32 to vector<128x128xf32>
    %33 = arith.select %22, %31, %32 : vector<128x128xi1>, vector<128x128xf32>
    %34 = arith.mulf %16, %33 : vector<128x128xf32>
    %35 = arith.mulf %17, %33 : vector<128x128xf32>
    %c0_16 = arith.constant 0 : index
    %c0_17 = arith.constant 0 : index
    %36 = vector.load %arg12[%c0_16, %c0_17] : memref<128x256xf32, #tpu.memory_space<vmem>>, vector<128x128xf32>
    tpu.vector_store %arg12[%c0_16, %c0_17], %34 {strides = array<i32>} : memref<128x256xf32, #tpu.memory_space<vmem>>, vector<128x128xf32>,
    %c0_18 = arith.constant 0 : index
    %c128 = arith.constant 128 : index
    %37 = vector.load %arg12[%c0_18, %c128] : memref<128x256xf32, #tpu.memory_space<vmem>>, vector<128x128xf32>
    tpu.vector_store %arg12[%c0_18, %c128], %35 {strides = array<i32>} : memref<128x256xf32, #tpu.memory_space<vmem>>, vector<128x128xf32>,
    %38 = tpu.concatenate %34, %35 in 1 : vector<128x128xf32>, vector<128x128xf32> -> vector<128x256xf32>
    %39 = arith.truncf %38 : vector<128x256xf32> to vector<128x256xbf16>
    %c0_19 = arith.constant 0 : index
    %c0_20 = arith.constant 0 : index
    %40 = vector.load %arg6[%c0_19, %c0_20] : memref<256x128xbf16, #tpu.memory_space<vmem>>, vector<256x128xbf16>
    %cst_21 = arith.constant dense<0.000000e+00> : vector<128x128xf32>
    %41 = tpu.matmul %39, %40, %cst_21 {dimension_numbers = #tpu.dot_dimension_numbers<[1], [0], [0], [1], [0, 0, 1, 1], [], []>} : vector<128x256xbf16>, vector<256x128xbf16>, vector<128x128xf32> -> vector<128x128xf32>
    %c0_22 = arith.constant 0 : index
    %c0_23 = arith.constant 0 : index
    %42 = vector.load %arg7[%c0_22, %c0_23] : memref<1x128xf32, #tpu.memory_space<vmem>>, vector<1x128xf32>
    %43 = vector.broadcast %42 : vector<1x128xf32> to vector<128x128xf32>
    %44 = arith.addf %41, %43 : vector<128x128xf32>
    %45 = math.tanh %44 : vector<128x128xf32>
    %46 = arith.truncf %45 : vector<128x128xf32> to vector<128x128xbf16>
    %c0_24 = arith.constant 0 : index
    %c0_25 = arith.constant 0 : index
    %47 = vector.load %arg8[%c0_24, %c0_25] : memref<128x256xbf16, #tpu.memory_space<vmem>>, vector<128x256xbf16>
    %cst_26 = arith.constant dense<0.000000e+00> : vector<128x256xf32>
    %48 = tpu.matmul %46, %47, %cst_26 {dimension_numbers = #tpu.dot_dimension_numbers<[1], [0], [0], [1], [0, 0, 1, 1], [], []>} : vector<128x128xbf16>, vector<128x256xbf16>, vector<128x256xf32> -> vector<128x256xf32>
    %c0_27 = arith.constant 0 : index
    %c0_28 = arith.constant 0 : index
    %49 = vector.load %arg9[%c0_27, %c0_28] : memref<1x256xf32, #tpu.memory_space<vmem>>, vector<1x256xf32>
    %50 = vector.broadcast %49 : vector<1x256xf32> to vector<128x256xf32>
    %51 = arith.addf %48, %50 : vector<128x256xf32>
    %c0_29 = arith.constant 0 : index
    %c0_30 = arith.constant 0 : index
    %52 = vector.load %arg11[%c0_29, %c0_30] : memref<128x256xf32, #tpu.memory_space<vmem>>, vector<128x256xf32>
    tpu.vector_store %arg11[%c0_29, %c0_30], %51 {strides = array<i32>} : memref<128x256xf32, #tpu.memory_space<vmem>>, vector<128x256xf32>,
    return
  }
  func.func @transform_0(%arg0: i32) -> (i32, i32) {
    %c0_i32 = arith.constant 0 : i32
    %c0_i32_0 = arith.constant 0 : i32
    return %arg0, %c0_i32 : i32, i32
  }
  func.func @transform_1(%arg0: i32) -> (i32, i32) {
    %c0_i32 = arith.constant 0 : i32
    %c0_i32_0 = arith.constant 0 : i32
    %c0_i32_1 = arith.constant 0 : i32
    return %c0_i32, %c0_i32_0 : i32, i32
  }
  func.func @transform_2(%arg0: i32) -> (i32, i32) {
    %c0_i32 = arith.constant 0 : i32
    %c0_i32_0 = arith.constant 0 : i32
    %c0_i32_1 = arith.constant 0 : i32
    return %c0_i32, %c0_i32_0 : i32, i32
  }
  func.func @transform_3(%arg0: i32) -> (i32, i32) {
    %c0_i32 = arith.constant 0 : i32
    %c0_i32_0 = arith.constant 0 : i32
    %c0_i32_1 = arith.constant 0 : i32
    return %c0_i32, %c0_i32_0 : i32, i32
  }
  func.func @transform_4(%arg0: i32) -> (i32, i32) {
    %c0_i32 = arith.constant 0 : i32
    %c0_i32_0 = arith.constant 0 : i32
    %c0_i32_1 = arith.constant 0 : i32
    return %c0_i32, %c0_i32_0 : i32, i32
  }
  func.func @transform_5(%arg0: i32) -> (i32, i32) {
    %c0_i32 = arith.constant 0 : i32
    %c0_i32_0 = arith.constant 0 : i32
    %c0_i32_1 = arith.constant 0 : i32
    return %c0_i32, %c0_i32_0 : i32, i32
  }
  func.func @transform_6(%arg0: i32) -> (i32, i32) {
    %c0_i32 = arith.constant 0 : i32
    %c0_i32_0 = arith.constant 0 : i32
    %c0_i32_1 = arith.constant 0 : i32
    return %c0_i32, %c0_i32_0 : i32, i32
  }
  func.func @transform_7(%arg0: i32) -> (i32, i32) {
    %c0_i32 = arith.constant 0 : i32
    %c0_i32_0 = arith.constant 0 : i32
    %c0_i32_1 = arith.constant 0 : i32
    return %c0_i32, %c0_i32_0 : i32, i32
  }
  func.func @transform_8(%arg0: i32) -> (i32, i32) {
    %c0_i32 = arith.constant 0 : i32
    %c0_i32_0 = arith.constant 0 : i32
    %c0_i32_1 = arith.constant 0 : i32
    return %c0_i32, %c0_i32_0 : i32, i32
  }
  func.func @transform_9(%arg0: i32) -> i32 {
    %c0_i32 = arith.constant 0 : i32
    %c0_i32_0 = arith.constant 0 : i32
    return %c0_i32 : i32
  }
  func.func @transform_10(%arg0: i32) -> (i32, i32) {
    %c0_i32 = arith.constant 0 : i32
    %c0_i32_0 = arith.constant 0 : i32
    return %arg0, %c0_i32 : i32, i32
  }
  func.func @transform_11(%arg0: i32) -> (i32, i32) {
    %c0_i32 = arith.constant 0 : i32
    %c0_i32_0 = arith.constant 0 : i32
    return %arg0, %c0_i32 : i32, i32
  }
}

</mosaic_0001>

<bundles_post_ra>
// kernel: tpu_custom_call.1
= control target key start
LH: loop header
LB: loop body
LE: loop exit
PB: predicated region body
PF: predicated region fallthrough
CT: control target
= control target key end

     0   :  { %s3570_s0 = inlined_call_operand.hbm [shape: f32[256,256], index: 0, kind: input, shape index: {}]   ;;  %s3571_s1 = inlined_call_operand.hbm [shape: bf16[256,128], index: 1, kind: input, shape index: {}]   ;;  %s3572_s2 = inlined_call_operand.vmem [shape: f32[1,128], index: 2, kind: input, shape index: {}]   ;;  %s3573_s3 = inlined_call_operand.hbm [shape: bf16[128,256], index: 3, kind: input, shape index: {}]   ;;  %s3574_s4 = inlined_call_operand.vmem [shape: f32[1,256], index: 4, kind: input, shape index: {}]   ;;  %s3575_s5 = inlined_call_operand.hbm [shape: bf16[256,128], index: 5, kind: input, shape index: {}]   ;;  %s3576_s6 = inlined_call_operand.vmem [shape: f32[1,128], index: 6, kind: input, shape index: {}]   ;;  %s3577_s7 = inlined_call_operand.hbm [shape: bf16[128,256], index: 7, kind: input, shape index: {}]   ;;  %s3578_s8 = inlined_call_operand.vmem [shape: f32[1,256], index: 8, kind: input, shape index: {}]   ;;  %s3579_s9 = inlined_call_operand.<no memory space> [shape: f32[1], index: 9, kind: input, shape index: {}]   ;;  %s3580_s10 = inlined_call_operand.hbm [shape: f32[256,256], index: 10, kind: output, shape index: {0}]   ;;  %s3581_s11 = inlined_call_operand.hbm [shape: f32[256,256], index: 11, kind: output, shape index: {1}]  }
   0x1   :  { %3586 = sst [smem:[#allocation20_spill]] %s3571_s1 }
   0x2   :  { %3587 = sst [smem:[#allocation21_spill]] %s3573_s3 }
   0x3   :  { %3588 = sst [smem:[#allocation22_spill]] %s3575_s5 }
   0x4   :  { %3589 = sst [smem:[#allocation23_spill]] %s3577_s7 }
   0x5   :  { %17 = sst [smem:[#allocation2]] %s3579_s9 }
   0x6   :  { %18 = vsyncpa [#allocation4], 0 }
   0x7   :  { %20 = vsyncpa [#allocation4 + $0x1], 0 }
   0x8   :  { %21 = vsyncpa [#allocation7], 0 }
   0x9   :  { %22 = vsyncpa [#allocation10], 0 }
   0xa   :  { %23 = vsyncpa [#allocation5], 0 }
   0xb   :  { %25 = vsyncpa [#allocation5 + $0x1], 0 }
   0xc   :  { %26 = vsyncpa [#allocation14], 0 }
   0xd   :  { %28 = vsyncpa [#allocation14 + $0x1], 0  ;;  %s2758_s19 = smov 0   ;;  %s2760_s20 = smov 0  }
   0xe   :  { %s2762_s21 = smov 0   ;;  %s2764_s22 = smov 0  }
   0xf LB: > { %s2779_s9 = sadd.s32 4294967295, %s2677_s22   ;;  %s1937_s23 = sadd.s32 4294967294, %s2677_s22   ;;  %s2677_s22 = sphi %s2764_s22, %s3613_s22   ;;  %s2673_s21 = sphi %s2762_s21, %s3612_s21   ;;  %s2669_s20 = sphi %s2760_s20, %s3611_s20   ;;  %s2665_s19 = sphi %s2758_s19, %s3610_s19  }
  0x10   : > { %p54_p0 = scmp.ne.s32.totalorder %s2669_s20, %s2665_s19  ;;  %p3582_p1 = scmp.eq.s32.totalorder %s2779_s9, 0 }
  0x11   : > { %p273_p3 = scmp.eq.s32.totalorder %s1937_s23, 1  ;;  %p1938_p5 = scmp.ge.s32.totalorder %s2677_s22, 1 }
  0x12   : > { %p2788_p4 = por %p3582_p1, %p54_p0  ;;  %p306_p7 = scmp.lt.s32.totalorder %s2677_s22, 3 }
  0x13   : > { %p2793_p6 = por %p273_p3, %p54_p0  ;;  %s2679_s27 = smov [#allocation6]  }
  0x14   : > { %s3590_s24 = scalar_select %p2788_p4, 1, 0 }
  0x15   : > { %s3591_s25 = scalar_select %p2793_p6, 1, 0 }
  0x16   : > { %p2798_p8 = pnand %p1938_p5, %p306_p7  ;;  %s318_s28 = sshll.u32 %s2679_s27, 4  ;;  %s319_s28 = int_to_ptr.vmem [resolvable:$true] %s318_s28 }
  0x17   : > { %s2680_s30 = smov [#allocation9]   ;;  %s2681_s13 = smov [#allocation8]  }
  0x18   : > { %s3592_s26 = scalar_select %p2798_p8, 1, 0 }
  0x19   : > { %p2188_p9 = pneg %p2798_p8  ;;  %s350_s12 = sshll.u32 %s2680_s30, 4  ;;  %s351_s12 = int_to_ptr.vmem [resolvable:$true] %s350_s12 }
  0x1a   : > { %s334_s14 = sshll.u32 %s2681_s13, 4  ;;  %s2454_s15 = scalar_lea.vmem %s319_s28, 2048  ;;  %s335_s14 = int_to_ptr.vmem [resolvable:$true] %s334_s14 }
  0x1b   : > { %p2807_p11 = pnand %p2188_p9, %p3582_p1  ;;  %p2455_p13 = scmp.ne.s32.totalorder %s319_s28, %s2454_s15 }
  0x1c   : > { %p2462_p5 = scmp.lt.s32.totalorder %s319_s28, %s319_s28  ;;  %p2463_p7 = scmp.lt.s32.totalorder %s2454_s15, %s2454_s15 }
  0x1d   : > { %p2445_p12 = pneg %p2807_p11 }
  0x1e   : > { %p2464_p9 = por %p2463_p7, %p2462_p5 }
  0x1f   : > { %p2457_p0 = pnand %p2455_p13, %p2445_p12 }
  0x21   : > { %p2458_p3 = pneg %p2457_p0 }
  0x23   : > { %p2465_p10 = pnand %p2464_p9, %p2458_p3 }
  0x25   : > { %2468 = shalt.err (!%p2465_p10)
}
  0x26   : > { %s2682_s16 = smov 64   ;;  %s2683_s17 = smov 4  }
  0x27   : > { %s3594_s1 = sld [smem:[#allocation20_spill]]  ;;  %s2480_s27 = scalar_lea.vmem %s351_s12, 2048 }
  0x28   : > { %p2481_p1 = scmp.ne.s32.totalorder %s351_s12, %s2480_s27  ;;  %p2488_p2 = scmp.lt.s32.totalorder %s351_s12, %s351_s12 }
  0x29   : > { %p2489_p6 = scmp.lt.s32.totalorder %s2480_s27, %s2480_s27 }
  0x2a   : > { %p2483_p13 = pnand %p2481_p1, %p2445_p12 }
  0x2b   : > { %p2490_p5 = por %p2489_p6, %p2488_p2 }
  0x2c   : > { %p2484_p0 = pneg %p2483_p13 }
  0x2d   : > { %2191 = dma.hbm_to_vmem [thread:$0]  (!%p2807_p11), %s3594_s1, 2048, %s319_s28, [#allocation7], %s2682_s16, %s2682_s16, %s2683_s17  }
  0x2e   : > { %p2491_p3 = pnand %p2490_p5, %p2484_p0 }
  0x30   : > { %2494 = shalt.err (!%p2491_p3)
}
  0x31   : > { %s3595_s5 = sld [smem:[#allocation22_spill]]  ;;  %s2506_s28 = scalar_lea.vmem %s335_s14, 2048 }
  0x32   : > { %p2507_p10 = scmp.ne.s32.totalorder %s335_s14, %s2506_s28  ;;  %p2514_p9 = scmp.lt.s32.totalorder %s335_s14, %s335_s14 }
  0x33   : > { %p2515_p13 = scmp.lt.s32.totalorder %s2506_s28, %s2506_s28 }
  0x34   : > { %p2509_p7 = pnand %p2507_p10, %p2445_p12 }
  0x35   : > { %p2516_p4 = por %p2515_p13, %p2514_p9 }
  0x36   : > { %p2510_p1 = pneg %p2509_p7 }
  0x37   : > { %2197 = dma.hbm_to_vmem [thread:$0]  (!%p2807_p11), %s3595_s5, 2048, %s351_s12, [#allocation10], %s2682_s16, %s2682_s16, %s2683_s17  }
  0x38   : > { %p2517_p2 = pnand %p2516_p4, %p2510_p1 }
  0x3a   : > { %2520 = shalt.err (!%p2517_p2)
}
  0x3b   : > { %s2684_s15 = smov 128   ;;  %s2685_s18 = smov 8  }
  0x3c   : > { %s3596_s3 = sld [smem:[#allocation21_spill]]  ;;  %s2686_s12 = smov [#allocation11]  }
  0x3d   : > { %s366_s16 = sshll.u32 %s2686_s12, 4  ;;  %s367_s16 = int_to_ptr.vmem [resolvable:$true] %s366_s16 }
  0x3e   : > { %s2532_s17 = scalar_lea.vmem %s367_s16, 2048  ;;  %p2540_p4 = scmp.lt.s32.totalorder %s367_s16, %s367_s16 }
  0x3f   : > { %p2533_p6 = scmp.ne.s32.totalorder %s367_s16, %s2532_s17  ;;  %p2541_p3 = scmp.lt.s32.totalorder %s2532_s17, %s2532_s17 }
  0x41   : > { %p2535_p0 = pnand %p2533_p6, %p2445_p12  ;;  %p2542_p10 = por %p2541_p3, %p2540_p4 }
  0x42   : > { %2194 = dma.hbm_to_vmem [thread:$0]  (!%p2807_p11), %s3596_s3, 2048, %s335_s14, [#allocation7], %s2684_s15, %s2684_s15, %s2685_s18  }
  0x43   : > { %p2536_p5 = pneg %p2535_p0 }
  0x45   : > { %p2543_p7 = pnand %p2542_p10, %p2536_p5 }
  0x47   : > { %2546 = shalt.err (!%p2543_p7)
}
  0x48   : > { %s3597_s7 = sld [smem:[#allocation23_spill]]  ;;  %s2846_s14 = sadd.s32 1, %s2677_s22  }
  0x49   : > { %s41_s28 = sadd.s32 1, %s2673_s21  ;;  %s38_s29 = ssub.s32 %s2677_s22, %s2846_s14 }
  0x4a   : > { %p48_p12 = scmp.ne.s32.totalorder %s2673_s21, %s2669_s20  ;;  %p39_p1 = scmp.eq.s32.totalorder %s38_s29, 0 }
  0x4b   : > { %p49_p9 = scmp.eq.s32.totalorder %s2677_s22, 0  ;;  %p3598_p13 = scmp.eq.s32.totalorder %s2779_s9, 1 }
  0x4c   : > { %p2216_p6 = scmp.lt.s32.totalorder %s2677_s22, 2  ;;  %s386_s12 = sand.u32 1, %s2673_s21  }
  0x4d   : > { %p2856_p2 = por %p3598_p13, %p48_p12  ;;  %p50_p0 = por %p49_p9, %p48_p12 }
  0x4e   : > { %2200 = dma.hbm_to_vmem [thread:$0]  (!%p2807_p11), %s3597_s7, 2048, %s367_s16, [#allocation10], %s2684_s15, %s2684_s15, %s2685_s18  }
  0x4f   : > { %s3599_s23 = scalar_select %p2856_p2, 1, 0 }
  0x50   : > { %s2862_s27 = scalar_select %p39_p1, %s2673_s21, %s41_s28  }
  0x51   : > { %s1944_s17 = sshll.u32 %s386_s12, 8  ;;  %s2033_s15 = sshll.u32 %s2677_s22, 12 }
  0x52   : > { %s2869_s30 = scalar_lea.hbm %s3570_s0, %s2033_s15  ;;  %s390_s13 = scalar_lea.vmem [#allocation3], %s1944_s17 }
  0x53   : > { %s398_s29 = sshll.u32 %s390_s13, 4  ;;  %p2873_p11 = pnand %p2216_p6, %p50_p0  ;;  %s2871_s29 = int_to_ptr.vmem [resolvable:$true] %s398_s29 }
  0x54   : > { %s2877_s28 = scalar_lea.sflag [#allocation4], %s386_s12  ;;  %s2547_s3 = scalar_lea.hbm %s2869_s30, 4096 }
  0x55   : > { %p2548_p5 = scmp.ne.s32.totalorder %s2869_s30, %s2547_s3  ;;  %p2549_p4 = pneg %p2873_p11 }
  0x56   : > { %s2552_s17 = scalar_lea.hbm %s3570_s0, 8192  ;;  %p2553_p7 = scmp.lt.s32.totalorder %s2869_s30, %s3570_s0 }
  0x57   : > { %p2550_p3 = pnand %p2549_p4, %p2548_p5  ;;  %p2554_p12 = scmp.lt.s32.totalorder %s2552_s17, %s2547_s3 }
  0x59   : > { %p2551_p10 = pneg %p2550_p3  ;;  %p2555_p1 = por %p2554_p12, %p2553_p7 }
  0x5b   : > { %p2556_p9 = pnand %p2555_p1, %p2551_p10 }
  0x5d   : > { %2559 = shalt.err (!%p2556_p9)
}
  0x5e   : > { %s2560_s12 = scalar_lea.vmem %s2871_s29, 4096  ;;  %s2687_s5 = smov [#allocation3]  }
  0x5f   : > { %p2561_p13 = scmp.ne.s32.totalorder %s2871_s29, %s2560_s12  ;;  %s2565_s7 = sshll.u32 %s2687_s5, 4  ;;  %s2566_s7 = int_to_ptr.vmem [resolvable:$false] %s2565_s7 }
  0x60   : > { %s2567_s15 = scalar_lea.vmem %s2566_s7, 8192  ;;  %p2568_p5 = scmp.lt.s32.totalorder %s2871_s29, %s2566_s7 }
  0x61   : > { %p2563_p6 = pnand %p2561_p13, %p2549_p4  ;;  %p2569_p3 = scmp.lt.s32.totalorder %s2567_s15, %s2560_s12 }
  0x63   : > { %p2564_p0 = pneg %p2563_p6  ;;  %p2570_p2 = por %p2569_p3, %p2568_p5 }
  0x65   : > { %p2571_p8 = pnand %p2570_p2, %p2564_p0 }
  0x67   : > { %2574 = shalt.err (!%p2571_p8)
}
  0x68   : > { %s2688_s3 = smov 256   ;;  %s2689_s18 = smov 16  }
  0x69   : > { %2204 = dma.hbm_to_vmem [thread:$0]  (!%p2873_p11), %s2869_s30, 4096, %s2871_s29, %s2877_s28, %s2688_s3, %s2688_s3, %s2689_s18  }
  0x6a   : > { %p3601_p4 = scmp.ne.s32.totalorder %s3592_s26, 0 }
  0x6b   : > { %s2901_s5 = sand.u32 (!%p3601_p4), 1, %s2669_s20   ;;  %p3602_p8 = scmp.ne.s32.totalorder (!%p3601_p4), %s3590_s24, 0 }
  0x6c   : > { %410 = sbr.rel (%p3601_p4) target bundleno = 1096 (0x448), region = 60  ;;  %s2904_s7 = sshll.u32 (!%p3601_p4), %s2901_s5, 8 }
  0x6d   : > { %s413_s17 = scalar_lea.sflag (!%p3601_p4), [#allocation4], %s2901_s5  ;;  %s2908_s16 = scalar_lea.vmem (!%p3601_p4), [#allocation3], %s2904_s7 }
  0x71   : > { %2644 = dma.done.wait (%p3602_p8), %s413_s17, 4096  }
  0x72   : > { %2646 = vsyncadd (%p3602_p8), %s413_s17, 4294963200  ;;  %p3603_p2 = scmp.eq.s32.totalorder %s2779_s9, 0 }
  0x74   : > { %2648 = dma.done.wait (%p3603_p2), [#allocation7], 4096   ;;  %p3604_p11 = pmov %p3603_p2 }
  0x75   : > { %p3605_p10 = pmov %p3603_p2 }
  0x76   : > { %2650 = vsyncadd (%p3604_p11), [#allocation7], 4294963200 }
  0x77   : > { %2652 = dma.done.wait (%p3605_p10), [#allocation10], 4096   ;;  %p3606_p7 = pmov %p3603_p2 }
  0x78   : > { %v2267_v0 = vld [vmem:[#allocation6 + $0x78] sm:$0xff]   ;;  %v2269_v2 = vld [vmem:[#allocation6 + $0x70] sm:$0xff]   ;;  %v2271_v4 = vld [vmem:[#allocation6 + $0x68] sm:$0xff]   ;;  %s3028_s29 = sld [smem:[#allocation2]]  ;;  %s3129_s13 = scalar_lea.vmem [#allocation13], %s2904_s7 }
  0x79   : > { %2654 = vsyncadd (%p3606_p7), [#allocation10], 4294963200  ;;  %v2268_v1 = vld [vmem:[#allocation6 + $0x38] sm:$0xff]   ;;  %2038 = vmatprep.subr.bf16.mxu0 %v2267_v0  ;;  %v2270_v3 = vld [vmem:[#allocation6 + $0x30] sm:$0xff]   ;;  %s2035_s3 = sshll.u32 %s2779_s9, 12  ;;  %s1794_s1 = sshll.u32 %s3129_s13, 4  ;;  %s3412_s1 = int_to_ptr.vmem [resolvable:$true] %s1794_s1 }
  0x7a   : > { %2039 = vmatpush3.bf16.msra.mxu0 %v2268_v1  ;;  %v2272_v5 = vld [vmem:[#allocation6 + $0x28] sm:$0xff]   ;;  %v2273_v6 = vld [vmem:[#allocation6 + $0x60] sm:$0xff]   ;;  %v2275_v8 = vld [vmem:[#allocation6 + $0x58] sm:$0xff]   ;;  %s1763_s24 = scalar_lea.sflag [#allocation14], %s2901_s5  ;;  %s2575_s26 = scalar_lea.vmem %s3412_s1, 4096 }
  0x7b   : > { %2040 = vmatprep.subr.bf16.mxu0 %v2269_v2  ;;  %v2274_v7 = vld [vmem:[#allocation6 + $0x20] sm:$0xff]   ;;  %v2276_v9 = vld [vmem:[#allocation6 + $0x18] sm:$0xff]   ;;  %v2277_v10 = vld [vmem:[#allocation6 + $0x50] sm:$0xff]   ;;  %p2576_p12 = scmp.ne.s32.totalorder %s3412_s1, %s2575_s26  ;;  %p3607_p1 = scmp.ne.s32.totalorder %s3599_s23, 0 }
  0x7c   : > { %v481_v11 = vld [vmem:[%s2908_s16 + $0x8] sm:$0xff]  ;;  %v483_v12 = vld [vmem:[%s2908_s16 + $0x18] sm:$0xff]  ;;  %v2278_v14 = vld [vmem:[#allocation6 + $0x10] sm:$0xff]   ;;  %s2691_s30 = smov [#allocation13]  }
  0x7d   : > { %v513_v13 = vpack.c.bf16 %v483_v12, %v481_v11  ;;  %v2279_v15 = vld [vmem:[#allocation6 + $0x48] sm:$0xff]   ;;  %v2281_v17 = vld [vmem:[#allocation6 + $0x40] sm:$0xff]   ;;  %v482_v20 = vld [vmem:[%s2908_s16 + $0x10] sm:$0xff]  ;;  %p2577_p9 = pnand %p2576_p12, %p3607_p1 }
  0x7e   : > { %2041 = vmatpush3.bf16.msra.mxu0 %v2270_v3  ;;  %v2280_v16 = vld [vmem:[#allocation6 + $0x8] sm:$0xff]   ;;  %v2282_v18 = vld [vmem:[#allocation6] sm:$0xff]   ;;  %v487_v22 = vld [vmem:[%s2908_s16 + $0x38] sm:$0xff]  ;;  %s1006_s28 = sand.u32 2147483647, %s3028_s29  ;;  %s2579_s29 = sshll.u32 %s2691_s30, 4  ;;  %s2580_s29 = int_to_ptr.vmem [resolvable:$false] %s2579_s29 }
  0x7f   : > { %2042 = vmatprep.subr.bf16.mxu0 %v2271_v4  ;;  %695 = vmatprep.mubr.bf16.mxu0 %v513_v13  ;;  %v480_v19 = vld [vmem:[%s2908_s16] sm:$0xff]  ;;  %v485_v21 = vld [vmem:[%s2908_s16 + $0x28] sm:$0xff]  ;;  %v2283_v23 = vld [vmem:[#allocation8 + $0x74] ss:$8 sps:$4 sm:$0xff]   ;;  %p2578_p13 = pneg %p2577_p9  ;;  %p2582_p6 = scmp.lt.s32.totalorder %s3412_s1, %s2580_s29 }
  0x80   : > { %v2285_v24 = vld [vmem:[#allocation8 + $0x70] ss:$8 sps:$4 sm:$0xff]   ;;  %v2286_v25 = vld [vmem:[#allocation8 + $0x64] ss:$8 sps:$4 sm:$0xff]   ;;  %892 = vmatprep.subr.bf16.mxu1 %v2283_v23  ;;  %v512_v26 = vpack.c.bf16 %v482_v20, %v480_v19  ;;  %v515_v27 = vpack.c.bf16 %v487_v22, %v485_v21  ;;  %v2288_v3 = vld [vmem:[#allocation8 + $0x60] ss:$8 sps:$4 sm:$0xff]  }
  0x81   : > { %893 = vmatpush1.bf16.msra.mxu1 %v2285_v24  ;;  %v484_v28 = vld [vmem:[%s2908_s16 + $0x20] sm:$0xff]  ;;  %v486_v29 = vld [vmem:[%s2908_s16 + $0x30] sm:$0xff]  ;;  %v489_v30 = vld [vmem:[%s2908_s16 + $0x48] sm:$0xff] }
  0x82   : > { %2043 = vmatpush3.bf16.msra.mxu0 %v2272_v5  ;;  %894 = vmatprep.subr.bf16.mxu1 %v2286_v25  ;;  %v491_v31 = vld [vmem:[%s2908_s16 + $0x58] sm:$0xff]  ;;  %v514_v32 = vpack.c.bf16 %v486_v29, %v484_v28  ;;  %v488_v34 = vld [vmem:[%s2908_s16 + $0x40] sm:$0xff]  ;;  %v490_v35 = vld [vmem:[%s2908_s16 + $0x50] sm:$0xff] }
  0x83   : > { %2044 = vmatprep.subr.bf16.mxu0 %v2273_v6  ;;  %v517_v33 = vpack.c.bf16 %v491_v31, %v489_v30  ;;  %v493_v36 = vld [vmem:[%s2908_s16 + $0x68] sm:$0xff]  ;;  %v495_v37 = vld [vmem:[%s2908_s16 + $0x78] sm:$0xff]  ;;  %v516_v38 = vpack.c.bf16 %v490_v35, %v488_v34  ;;  %v492_v40 = vld [vmem:[%s2908_s16 + $0x60] sm:$0xff] }
  0x84   : > { %v519_v39 = vpack.c.bf16 %v495_v37, %v493_v36  ;;  %v494_v41 = vld [vmem:[%s2908_s16 + $0x70] sm:$0xff]  ;;  %v497_v42 = vld [vmem:[%s2908_s16 + $0x88] sm:$0xff]  ;;  %v499_v43 = vld [vmem:[%s2908_s16 + $0x98] sm:$0xff] }
  0x85   : > { %v518_v44 = vpack.c.bf16 %v494_v41, %v492_v40  ;;  %v521_v45 = vpack.c.bf16 %v499_v43, %v497_v42  ;;  %v496_v46 = vld [vmem:[%s2908_s16 + $0x80] sm:$0xff]  ;;  %v498_v47 = vld [vmem:[%s2908_s16 + $0x90] sm:$0xff]  ;;  %v501_v48 = vld [vmem:[%s2908_s16 + $0xa8] sm:$0xff]  ;;  %895 = vmatpush1.bf16.msra.mxu1 %v2288_v3 }
  0x86   : > { %2045 = vmatpush3.bf16.msra.mxu0 %v2274_v7  ;;  %v503_v49 = vld [vmem:[%s2908_s16 + $0xb8] sm:$0xff]  ;;  %v520_v50 = vpack.c.bf16 %v498_v47, %v496_v46  ;;  %v500_v52 = vld [vmem:[%s2908_s16 + $0xa0] sm:$0xff]  ;;  %v502_v53 = vld [vmem:[%s2908_s16 + $0xb0] sm:$0xff] }
  0x87   : > { %2046 = vmatprep.subr.bf16.mxu0 %v2275_v8  ;;  %v523_v51 = vpack.c.bf16 %v503_v49, %v501_v48  ;;  %v505_v54 = vld [vmem:[%s2908_s16 + $0xc8] sm:$0xff]  ;;  %v507_v55 = vld [vmem:[%s2908_s16 + $0xd8] sm:$0xff]  ;;  %v522_v56 = vpack.c.bf16 %v502_v53, %v500_v52  ;;  %v504_v58 = vld [vmem:[%s2908_s16 + $0xc0] sm:$0xff] }
  0x88   : > { %v525_v57 = vpack.c.bf16 %v507_v55, %v505_v54  ;;  %v506_v59 = vld [vmem:[%s2908_s16 + $0xd0] sm:$0xff]  ;;  %v509_v60 = vld [vmem:[%s2908_s16 + $0xe8] sm:$0xff]  ;;  %v511_v61 = vld [vmem:[%s2908_s16 + $0xf8] sm:$0xff] }
  0x89   : > { %v524_v62 = vpack.c.bf16 %v506_v59, %v504_v58  ;;  %v527_v63 = vpack.c.bf16 %v511_v61, %v509_v60  ;;  %v508_v0 = vld [vmem:[%s2908_s16 + $0xe0] sm:$0xff]  ;;  %v510_v1 = vld [vmem:[%s2908_s16 + $0xf0] sm:$0xff]  ;;  %v2311_v21 = vld [vmem:[#allocation9 + $0x68] sm:$0xff]   ;;  %s3409_s16 = scalar_lea.hbm %s3581_s11, %s2035_s3 }
  0x8a   : > { %2047 = vmatpush3.bf16.msra.mxu0 %v2276_v9  ;;  %v526_v2 = vpack.c.bf16 %v510_v1, %v508_v0  ;;  %v2289_v4 = vld [vmem:[#allocation8 + $0x54] ss:$8 sps:$4 sm:$0xff]   ;;  %v2291_v5 = vld [vmem:[#allocation8 + $0x50] ss:$8 sps:$4 sm:$0xff]   ;;  %v2292_v6 = vld [vmem:[#allocation8 + $0x44] ss:$8 sps:$4 sm:$0xff]  }
  0x8b   : > { %2048 = vmatprep.subr.bf16.mxu0 %v2277_v10  ;;  %896 = vmatprep.subr.bf16.mxu1 %v2289_v4  ;;  %v2294_v7 = vld [vmem:[#allocation8 + $0x40] ss:$8 sps:$4 sm:$0xff]   ;;  %v2295_v8 = vld [vmem:[#allocation8 + $0x34] ss:$8 sps:$4 sm:$0xff]   ;;  %v2297_v9 = vld [vmem:[#allocation8 + $0x30] ss:$8 sps:$4 sm:$0xff]  }
  0x8c   : > { %897 = vmatpush1.bf16.msra.mxu1 %v2291_v5  ;;  %v2298_v10 = vld [vmem:[#allocation8 + $0x24] ss:$8 sps:$4 sm:$0xff]   ;;  %v2300_v11 = vld [vmem:[#allocation8 + $0x20] ss:$8 sps:$4 sm:$0xff]   ;;  %v2301_v12 = vld [vmem:[#allocation8 + $0x14] ss:$8 sps:$4 sm:$0xff]  }
  0x8d   : > { %898 = vmatprep.subr.bf16.mxu1 %v2292_v6  ;;  %v2303_v13 = vld [vmem:[#allocation8 + $0x10] ss:$8 sps:$4 sm:$0xff]   ;;  %v2312_v22 = vld [vmem:[#allocation9 + $0x28] sm:$0xff]   ;;  %v2958_v25 = vld [vmem:[%s3572_s2] ss:$0 sm:$0xff] }
  0x8e   : > { %2049 = vmatpush3.bf16.msra.mxu0 %v2278_v14  ;;  %v2304_v14 = vld [vmem:[#allocation8 + $0x4] ss:$8 sps:$4 sm:$0xff]   ;;  %v2309_v19 = vld [vmem:[#allocation9 + $0x70] sm:$0xff]  }
  0x8f   : > { %2050 = vmatprep.subr.bf16.mxu0 %v2279_v15  ;;  %v2306_v15 = vld [vmem:[#allocation8] ss:$8 sps:$4 sm:$0xff]   ;;  %v2310_v20 = vld [vmem:[#allocation9 + $0x30] sm:$0xff]  }
  0x90   : > { %899 = vmatpush1.bf16.msra.mxu1 %v2294_v7 }
  0x91   : > { %900 = vmatprep.subr.bf16.mxu1 %v2295_v8 }
  0x92   : > { %2051 = vmatpush3.bf16.msra.mxu0 %v2280_v16  ;;  %v2690_v16 = vmov 0  }
  0x93   : > { %2052 = vmatprep.subr.bf16.mxu0 %v2281_v17  ;;  %924 = vmatprep.mubr.bf16.mxu1 %v2690_v16  ;;  %v2307_v17 = vld [vmem:[#allocation9 + $0x78] sm:$0xff]  }
  0x94   : > { %901 = vmatpush1.bf16.msra.mxu1 %v2297_v9 }
  0x95   : > { %902 = vmatprep.subr.bf16.mxu1 %v2298_v10 }
  0x96   : > { %2053 = vmatpush3.bf16.msra.mxu0 %v2282_v18  ;;  %v2308_v18 = vld [vmem:[#allocation9 + $0x38] sm:$0xff]  }
  0x97   : > { %2102 = vmatprep.subr.bf16.mxu0 %v2307_v17 }
  0x98   : > { %903 = vmatpush1.bf16.msra.mxu1 %v2300_v11 }
  0x99   : > { %696 = vmatmul.mubr.bf16.vlgmr.msra.gmra.mxu0 %v512_v26  ;;  %904 = vmatprep.subr.bf16.mxu1 %v2301_v12 }
  0x9a   : > { %703 = vmatprep.mubr.bf16.mxu0 %v515_v27  ;;  %2103 = vmatpush3.bf16.msra.mxu0 %v2308_v18 }
  0x9b   : > { %2104 = vmatprep.subr.bf16.mxu0 %v2309_v19 }
  0x9c   : > { %905 = vmatpush1.bf16.msra.mxu1 %v2303_v13 }
  0x9d   : > { %906 = vmatprep.subr.bf16.mxu1 %v2304_v14 }
  0x9e   : > { %2105 = vmatpush3.bf16.msra.mxu0 %v2310_v20 }
  0x9f   : > { %2106 = vmatprep.subr.bf16.mxu0 %v2311_v21 }
  0xa0   : > { %907 = vmatpush1.bf16.msra.mxu1 %v2306_v15 }
  0xa1   : > { %704 = vmatmul.mubr.bf16.gmra.mxu0 %v514_v32 }
  0xa2   : > { %711 = vmatprep.mubr.bf16.mxu0 %v517_v33  ;;  %2107 = vmatpush3.bf16.msra.mxu0 %v2312_v22 }
  0xa9   : > { %712 = vmatmul.mubr.bf16.gmra.mxu0 %v516_v38 }
  0xaa   : > { %719 = vmatprep.mubr.bf16.mxu0 %v519_v39 }
  0xb1   : > { %720 = vmatmul.mubr.bf16.gmra.mxu0 %v518_v44 }
  0xb2   : > { %727 = vmatprep.mubr.bf16.mxu0 %v521_v45 }
  0xb9   : > { %728 = vmatmul.mubr.bf16.gmra.mxu0 %v520_v50 }
  0xba   : > { %735 = vmatprep.mubr.bf16.mxu0 %v523_v51 }
  0xc1   : > { %736 = vmatmul.mubr.bf16.gmra.mxu0 %v522_v56 }
  0xc2   : > { %743 = vmatprep.mubr.bf16.mxu0 %v525_v57 }
  0xc9   : > { %744 = vmatmul.mubr.bf16.gmra.mxu0 %v524_v62 }
  0xca   : > { %751 = vmatprep.mubr.bf16.mxu0 %v527_v63 }
  0xd1   : > { %752 = vmatmul.mubr.bf16.gmra.mxu0 %v526_v2 }
 0x159   : > { %v2054_v23 = vpop.f32.mrf.mxu0 }
 0x15b   : > { %v2055_v24 = vpop.f32.mrf.mxu0 }
 0x15c   : > { %v2056_v26 = vadd.f32 %v2055_v24, %v2054_v23 }
 0x15d   : > { %v2057_v27 = vpop.f32.mrf.mxu0 }
 0x15e   : > { %v698_v28 = vadd.f32 %v2056_v26, %v2958_v25 }
 0x15f   : > { %v2058_v29 = vpop.f32.mrf.mxu0 }
 0x160   : > { %v2059_v30 = vadd.f32 %v2058_v29, %v2057_v27  ;;  %2347 = vtanh.f32 %v698_v28 }
 0x161   : > { %v2060_v31 = vpop.f32.mrf.mxu0 }
 0x162   : > { %v701_v32 = vadd.f32 %v2059_v30, %v2958_v25 }
 0x163   : > { %v2061_v33 = vpop.f32.mrf.mxu0 }
 0x164   : > { %2349 = vtanh.f32 %v701_v32  ;;  %v2062_v34 = vadd.f32 %v2061_v33, %v2060_v31 }
 0x165   : > { %v2063_v35 = vpop.f32.mrf.mxu0 }
 0x166   : > { %v706_v36 = vadd.f32 %v2062_v34, %v2958_v25 }
 0x167   : > { %v2064_v37 = vpop.f32.mrf.mxu0 }
 0x168   : > { %v2065_v38 = vadd.f32 %v2064_v37, %v2063_v35  ;;  %2351 = vtanh.f32 %v706_v36 }
 0x169   : > { %v2066_v39 = vpop.f32.mrf.mxu0 }
 0x16a   : > { %v709_v40 = vadd.f32 %v2065_v38, %v2958_v25 }
 0x16b   : > { %v2067_v41 = vpop.f32.mrf.mxu0 }
 0x16c   : > { %2353 = vtanh.f32 %v709_v40  ;;  %v2068_v42 = vadd.f32 %v2067_v41, %v2066_v39 }
 0x16d   : > { %v2069_v43 = vpop.f32.mrf.mxu0  ;;  %v2348_v46 = vpop.eup %2347 }
 0x16e   : > { %v714_v44 = vadd.f32 %v2068_v42, %v2958_v25 }
 0x16f   : > { %v2070_v45 = vpop.f32.mrf.mxu0 }
 0x170   : > { %v2071_v47 = vadd.f32 %v2070_v45, %v2069_v43  ;;  %2355 = vtanh.f32 %v714_v44 }
 0x171   : > { %v2350_v48 = vpop.eup %2349  ;;  %v2072_v49 = vpop.f32.mrf.mxu0 }
 0x172   : > { %v717_v50 = vadd.f32 %v2071_v47, %v2958_v25  ;;  %v776_v51 = vpack.c.bf16 %v2350_v48, %v2348_v46 }
 0x173   : > { %v2073_v52 = vpop.f32.mrf.mxu0 }
 0x174   : > { %2357 = vtanh.f32 %v717_v50  ;;  %v2074_v53 = vadd.f32 %v2073_v52, %v2072_v49  ;;  %925 = vmatmul.mubr.bf16.vlgmr.msra.gmra.mxu1 %v776_v51  ;;  %v2313_v50 = vld [vmem:[#allocation9 + $0x60] sm:$0xff]   ;;  %v2315_v51 = vld [vmem:[#allocation9 + $0x58] sm:$0xff]  }
 0x175   : > { %v2075_v54 = vpop.f32.mrf.mxu0  ;;  %934 = vmatprep.mubr.bf16.mxu1 %v2690_v16  ;;  %v2352_v57 = vpop.eup %2351  ;;  %2108 = vmatprep.subr.bf16.mxu0 %v2313_v50  ;;  %v2316_v52 = vld [vmem:[#allocation9 + $0x18] sm:$0xff]  }
 0x176   : > { %v722_v55 = vadd.f32 %v2074_v53, %v2958_v25  ;;  %v2317_v53 = vld [vmem:[#allocation9 + $0x50] sm:$0xff]  }
 0x177   : > { %v2076_v56 = vpop.f32.mrf.mxu0 }
 0x178   : > { %v2077_v58 = vadd.f32 %v2076_v56, %v2075_v54  ;;  %2359 = vtanh.f32 %v722_v55  ;;  %v2318_v54 = vld [vmem:[#allocation9 + $0x10] sm:$0xff]   ;;  %v2319_v55 = vld [vmem:[#allocation9 + $0x48] sm:$0xff]  }
 0x179   : > { %v2354_v59 = vpop.eup %2353  ;;  %v2078_v60 = vpop.f32.mrf.mxu0  ;;  %v2320_v56 = vld [vmem:[#allocation9 + $0x8] sm:$0xff]  }
 0x17a   : > { %v725_v61 = vadd.f32 %v2077_v58, %v2958_v25  ;;  %v777_v62 = vpack.c.bf16 %v2354_v59, %v2352_v57  ;;  %v2321_v57 = vld [vmem:[#allocation9 + $0x40] sm:$0xff]   ;;  %v2323_v59 = vld [vmem:[#allocation11 + $0x70] ss:$8 sps:$4 sm:$0xff]  }
 0x17b   : > { %v2079_v63 = vpop.f32.mrf.mxu0  ;;  %v2322_v58 = vld [vmem:[#allocation9] sm:$0xff]  }
 0x17c   : > { %2361 = vtanh.f32 %v725_v61  ;;  %v2080_v0 = vadd.f32 %v2079_v63, %v2078_v60  ;;  %935 = vmatmul.mubr.bf16.gmra.mxu1 %v777_v62  ;;  %v2325_v60 = vld [vmem:[#allocation11 + $0x74] ss:$8 sps:$4 sm:$0xff]   ;;  %v2328_v61 = vld [vmem:[#allocation11 + $0x64] ss:$8 sps:$4 sm:$0xff]   ;;  %v2326_v62 = vld [vmem:[#allocation11 + $0x60] ss:$8 sps:$4 sm:$0xff]  }
 0x17d   : > { %v2081_v1 = vpop.f32.mrf.mxu0  ;;  %944 = vmatprep.mubr.bf16.mxu1 %v2690_v16  ;;  %v2356_v4 = vpop.eup %2355  ;;  %1612 = vmatprep.subr.bf16.mxu1 %v2325_v60  ;;  %v2331_v63 = vld [vmem:[#allocation11 + $0x54] ss:$8 sps:$4 sm:$0xff]  }
 0x17e   : > { %v730_v2 = vadd.f32 %v2080_v0, %v2958_v25  ;;  %1613 = vmatpush1.bf16.msra.mxu1 %v2323_v59  ;;  %v2329_v0 = vld [vmem:[#allocation11 + $0x50] ss:$8 sps:$4 sm:$0xff]  }
 0x17f   : > { %v2082_v3 = vpop.f32.mrf.mxu0  ;;  %1614 = vmatprep.subr.bf16.mxu1 %v2328_v61 }
 0x180   : > { %v2083_v5 = vadd.f32 %v2082_v3, %v2081_v1  ;;  %2363 = vtanh.f32 %v730_v2  ;;  %v2334_v1 = vld [vmem:[#allocation11 + $0x44] ss:$8 sps:$4 sm:$0xff]   ;;  %v2332_v2 = vld [vmem:[#allocation11 + $0x40] ss:$8 sps:$4 sm:$0xff]   ;;  %v2337_v3 = vld [vmem:[#allocation11 + $0x34] ss:$8 sps:$4 sm:$0xff]  }
 0x181   : > { %v2358_v6 = vpop.eup %2357  ;;  %v2084_v7 = vpop.f32.mrf.mxu0 }
 0x182   : > { %v733_v8 = vadd.f32 %v2083_v5, %v2958_v25  ;;  %v778_v9 = vpack.c.bf16 %v2358_v6, %v2356_v4  ;;  %1615 = vmatpush1.bf16.msra.mxu1 %v2326_v62  ;;  %v802_v4 = vlaneseq  ;;  %v2335_v5 = vld [vmem:[#allocation11 + $0x30] ss:$8 sps:$4 sm:$0xff]  }
 0x183   : > { %v2085_v10 = vpop.f32.mrf.mxu0  ;;  %1616 = vmatprep.subr.bf16.mxu1 %v2331_v63 }
 0x184   : > { %2365 = vtanh.f32 %v733_v8  ;;  %v2086_v11 = vadd.f32 %v2085_v10, %v2084_v7  ;;  %945 = vmatmul.mubr.bf16.gmra.mxu1 %v778_v9  ;;  %v2984_v6 = vshrl.u32 %v802_v4, 7  ;;  %v800_v8 = vld [vmem:[%s3574_s4] sm:$0x3] }
 0x185   : > { %v2087_v12 = vpop.f32.mrf.mxu0  ;;  %954 = vmatprep.mubr.bf16.mxu1 %v2690_v16  ;;  %v2360_v15 = vpop.eup %2359 }
 0x186   : > { %v738_v13 = vadd.f32 %v2086_v11, %v2958_v25  ;;  %1617 = vmatpush1.bf16.msra.mxu1 %v2329_v0  ;;  %v804_v7 = vsub.s32 0, %v2984_v6  ;;  %v808_v9 = vsub.s32 1, %v2984_v6 }
 0x187   : > { %v2088_v14 = vpop.f32.mrf.mxu0  ;;  %1618 = vmatprep.subr.bf16.mxu1 %v2334_v1 }
 0x188   : > { %v2089_v17 = vadd.f32 %v2088_v14, %v2087_v12  ;;  %2367 = vtanh.f32 %v738_v13  ;;  %v2993_v10 = vrot.slane %v800_v8, %v804_v7  ;;  %v2997_v11 = vrot.slane %v800_v8, %v808_v9 }
 0x189   : > { %v2362_v18 = vpop.eup %2361  ;;  %v2090_v19 = vpop.f32.mrf.mxu0 }
 0x18a   : > { %v741_v20 = vadd.f32 %v2089_v17, %v2958_v25  ;;  %v779_v21 = vpack.c.bf16 %v2362_v18, %v2360_v15  ;;  %1619 = vmatpush1.bf16.msra.mxu1 %v2332_v2 }
 0x18b   : > { %v2091_v22 = vpop.f32.mrf.mxu0  ;;  %1620 = vmatprep.subr.bf16.mxu1 %v2337_v3 }
 0x18c   : > { %2369 = vtanh.f32 %v741_v20  ;;  %v2092_v23 = vadd.f32 %v2091_v22, %v2090_v19  ;;  %955 = vmatmul.mubr.bf16.gmra.mxu1 %v779_v21 }
 0x18d   : > { %v2093_v24 = vpop.f32.mrf.mxu0  ;;  %964 = vmatprep.mubr.bf16.mxu1 %v2690_v16  ;;  %v2364_v28 = vpop.eup %2363 }
 0x18e   : > { %v746_v26 = vadd.f32 %v2092_v23, %v2958_v25  ;;  %1621 = vmatpush1.bf16.msra.mxu1 %v2335_v5 }
 0x18f   : > { %v2094_v27 = vpop.f32.mrf.mxu0 }
 0x190   : > { %v2095_v29 = vadd.f32 %v2094_v27, %v2093_v24  ;;  %2371 = vtanh.f32 %v746_v26 }
 0x191   : > { %v2366_v30 = vpop.eup %2365  ;;  %v2096_v31 = vpop.f32.mrf.mxu0 }
 0x192   : > { %v749_v32 = vadd.f32 %v2095_v29, %v2958_v25  ;;  %v780_v33 = vpack.c.bf16 %v2366_v30, %v2364_v28 }
 0x193   : > { %v2097_v34 = vpop.f32.mrf.mxu0 }
 0x194   : > { %2373 = vtanh.f32 %v749_v32  ;;  %v2098_v35 = vadd.f32 %v2097_v34, %v2096_v31  ;;  %965 = vmatmul.mubr.bf16.gmra.mxu1 %v780_v33 }
 0x195   : > { %v2099_v36 = vpop.f32.mrf.mxu0  ;;  %974 = vmatprep.mubr.bf16.mxu1 %v2690_v16  ;;  %v2368_v39 = vpop.eup %2367 }
 0x196   : > { %v754_v37 = vadd.f32 %v2098_v35, %v2958_v25 }
 0x197   : > { %v2100_v38 = vpop.f32.mrf.mxu0 }
 0x198   : > { %v2101_v40 = vadd.f32 %v2100_v38, %v2099_v36  ;;  %2375 = vtanh.f32 %v754_v37 }
 0x199   : > { %v2370_v41 = vpop.eup %2369 }
 0x19a   : > { %v757_v42 = vadd.f32 %v2101_v40, %v2958_v25  ;;  %v781_v43 = vpack.c.bf16 %v2370_v41, %v2368_v39  ;;  %v2314_v25 = vld [vmem:[#allocation9 + $0x20] sm:$0xff]  }
 0x19b   : > { %2109 = vmatpush3.bf16.msra.mxu0 %v2314_v25 }
 0x19c   : > { %2377 = vtanh.f32 %v757_v42  ;;  %975 = vmatmul.mubr.bf16.gmra.mxu1 %v781_v43  ;;  %2110 = vmatprep.subr.bf16.mxu0 %v2315_v51 }
 0x19d   : > { %984 = vmatprep.mubr.bf16.mxu1 %v2690_v16  ;;  %v2372_v44 = vpop.eup %2371 }
 0x19f   : > { %2111 = vmatpush3.bf16.msra.mxu0 %v2316_v52  ;;  %v3076_v52 = vstv %s1006_s28  ;;  %s2581_s28 = scalar_lea.vmem %s2580_s29, 8192 }
 0x1a0   : > { %2112 = vmatprep.subr.bf16.mxu0 %v2317_v53  ;;  %p2583_p0 = scmp.lt.s32.totalorder %s2581_s28, %s2575_s26 }
 0x1a1   : > { %v2374_v45 = vpop.eup %2373 }
 0x1a2   : > { %v782_v46 = vpack.c.bf16 %v2374_v45, %v2372_v44  ;;  %p2584_p5 = por %p2583_p0, %p2582_p6 }
 0x1a3   : > { %2113 = vmatpush3.bf16.msra.mxu0 %v2318_v54 }
 0x1a4   : > { %985 = vmatmul.mubr.bf16.gmra.mxu1 %v782_v46  ;;  %2114 = vmatprep.subr.bf16.mxu0 %v2319_v55  ;;  %p2585_p3 = pnand %p2584_p5, %p2578_p13 }
 0x1a5   : > { %994 = vmatprep.mubr.bf16.mxu1 %v2690_v16  ;;  %v2376_v47 = vpop.eup %2375 }
 0x1a7   : > { %2115 = vmatpush3.bf16.msra.mxu0 %v2320_v56 }
 0x1a8   : > { %2116 = vmatprep.subr.bf16.mxu0 %v2321_v57 }
 0x1a9   : > { %v2378_v48 = vpop.eup %2377 }
 0x1aa   : > { %v783_v49 = vpack.c.bf16 %v2378_v48, %v2376_v47 }
 0x1ab   : > { %2117 = vmatpush3.bf16.msra.mxu0 %v2322_v58 }
 0x1ac   : > { %995 = vmatmul.mubr.bf16.gmra.mxu1 %v783_v49 }
 0x1ad   : > { %1644 = vmatprep.mubr.bf16.mxu1 %v2690_v16 }
 0x234   : > { %v926_v12 = vpop.f32.mrf.mxu1 }
 0x235   : > { %v3000_v13 = vadd.f32 %v926_v12, %v2993_v10 }
 0x236   : > { %v928_v14 = vpop.f32.mrf.mxu1 }
 0x237   : > { %v3003_v15 = vadd.f32 %v928_v14, %v2997_v11  ;;  %v1007_v18 = vmul.f32 %v3000_v13, %v3000_v13 }
 0x238   : > { %v930_v17 = vpop.f32.mrf.mxu1 }
 0x239   : > { %v1023_v19 = vmul.f32 %v3003_v15, %v3003_v15  ;;  %v3010_v20 = vadd.f32 %v930_v17, %v2993_v10 }
 0x23a   : > { %v932_v21 = vpop.f32.mrf.mxu1 }
 0x23b   : > { %v3012_v22 = vadd.f32 %v1023_v19, %v1007_v18  ;;  %v3015_v23 = vadd.f32 %v932_v21, %v2997_v11  ;;  %v1008_v26 = vmul.f32 %v3010_v20, %v3010_v20 }
 0x23c   : > { %v936_v24 = vpop.f32.mrf.mxu1 }
 0x23d   : > { %vm1055_vm0 = vcmp.gt.f32.partialorder %v3012_v22, 0.0  ;;  %v1024_v27 = vmul.f32 %v3015_v23, %v3015_v23  ;;  %v3023_v28 = vadd.f32 %v936_v24, %v2993_v10 }
 0x23e   : > { %v1071_v29 = vsel %vm1055_vm0, %v3012_v22, 1.0  ;;  %v938_v30 = vpop.f32.mrf.mxu1 }
 0x23f   : > { %2379 = vrsqrt.f32 %v1071_v29  ;;  %v3030_v31 = vadd.f32 %v1024_v27, %v1008_v26  ;;  %v3033_v32 = vadd.f32 %v938_v30, %v2997_v11  ;;  %v1009_v34 = vmul.f32 %v3023_v28, %v3023_v28 }
 0x240   : > { %v940_v33 = vpop.f32.mrf.mxu1 }
 0x241   : > { %vm1056_vm1 = vcmp.gt.f32.partialorder %v3030_v31, 0.0  ;;  %v1025_v35 = vmul.f32 %v3033_v32, %v3033_v32  ;;  %v3041_v36 = vadd.f32 %v940_v33, %v2993_v10 }
 0x242   : > { %v1072_v37 = vsel %vm1056_vm1, %v3030_v31, 1.0  ;;  %v942_v38 = vpop.f32.mrf.mxu1 }
 0x243   : > { %2381 = vrsqrt.f32 %v1072_v37  ;;  %v3046_v39 = vadd.f32 %v1025_v35, %v1009_v34  ;;  %v3049_v40 = vadd.f32 %v942_v38, %v2997_v11  ;;  %v1010_v42 = vmul.f32 %v3041_v36, %v3041_v36 }
 0x244   : > { %v946_v41 = vpop.f32.mrf.mxu1 }
 0x245   : > { %vm1057_vm2 = vcmp.gt.f32.partialorder %v3046_v39, 0.0  ;;  %v1026_v43 = vmul.f32 %v3049_v40, %v3049_v40  ;;  %v3057_v44 = vadd.f32 %v946_v41, %v2993_v10 }
 0x246   : > { %v1073_v45 = vsel %vm1057_vm2, %v3046_v39, 1.0  ;;  %v948_v46 = vpop.f32.mrf.mxu1 }
 0x247   : > { %2383 = vrsqrt.f32 %v1073_v45  ;;  %v3063_v47 = vadd.f32 %v1026_v43, %v1010_v42  ;;  %v3066_v48 = vadd.f32 %v948_v46, %v2997_v11  ;;  %v1011_v50 = vmul.f32 %v3057_v44, %v3057_v44 }
 0x248   : > { %v950_v49 = vpop.f32.mrf.mxu1 }
 0x249   : > { %vm1058_vm3 = vcmp.gt.f32.partialorder %v3063_v47, 0.0  ;;  %v1027_v25 = vmul.f32 %v3066_v48, %v3066_v48  ;;  %v3074_v51 = vadd.f32 %v950_v49, %v2993_v10 }
 0x24a   : > { %v1074_v53 = vsel %vm1058_vm3, %v3063_v47, 1.0  ;;  %v952_v54 = vpop.f32.mrf.mxu1 }
 0x24b   : > { %2385 = vrsqrt.f32 %v1074_v53  ;;  %v3081_v55 = vadd.f32 %v1027_v25, %v1011_v50  ;;  %v3084_v56 = vadd.f32 %v952_v54, %v2997_v11  ;;  %v1012_v60 = vmul.f32 %v3074_v51, %v3074_v51 }
 0x24c   : > { %v2380_v57 = vpop.eup %2379  ;;  %v956_v58 = vpop.f32.mrf.mxu1 }
 0x24d   : > { %v1104_v59 = vmul.f32 %v2380_v57, %v3076_v52  ;;  %vm1059_vm4 = vcmp.gt.f32.partialorder %v3081_v55, 0.0  ;;  %v1028_v61 = vmul.f32 %v3084_v56, %v3084_v56  ;;  %v3096_v63 = vadd.f32 %v956_v58, %v2993_v10 }
 0x24e   : > { %v1075_v62 = vsel %vm1059_vm4, %v3081_v55, 1.0  ;;  %v958_v0 = vpop.f32.mrf.mxu1 }
 0x24f   : > { %v1120_v1 = vsub.f32 1.0, %v1104_v59  ;;  %2387 = vrsqrt.f32 %v1075_v62  ;;  %v3098_v2 = vadd.f32 %v1028_v61, %v1012_v60  ;;  %v3101_v4 = vadd.f32 %v958_v0, %v2997_v11 }
 0x250   : > { %v2382_v3 = vpop.eup %2381  ;;  %v960_v5 = vpop.f32.mrf.mxu1  ;;  %v1013_v17 = vmul.f32 %v3096_v63, %v3096_v63 }
 0x251   : > { %v1136_v8 = vmax.f32 %v1120_v1, 0.0  ;;  %v1105_v12 = vmul.f32 %v2382_v3, %v3076_v52  ;;  %vm1060_vm5 = vcmp.gt.f32.partialorder %v3098_v2, 0.0  ;;  %v1029_v18 = vmul.f32 %v3101_v4, %v3101_v4 }
 0x252   : > { %v1076_v14 = vsel %vm1060_vm5, %v3098_v2, 1.0  ;;  %v3113_v19 = vadd.f32 %v960_v5, %v2993_v10  ;;  %v962_v21 = vpop.f32.mrf.mxu1 }
 0x253   : > { %v1152_v24 = vsel %vm1055_vm0, %v1136_v8, 0.0  ;;  %v1121_v26 = vsub.f32 1.0, %v1105_v12  ;;  %2389 = vrsqrt.f32 %v1076_v14  ;;  %v3119_v33 = vadd.f32 %v1029_v18, %v1013_v17 }
 0x254   : > { %v2384_v27 = vpop.eup %2383  ;;  %v1168_v29 = vmul.f32 %v1152_v24, %v3000_v13  ;;  %v1184_v30 = vmul.f32 %v1152_v24, %v3003_v15  ;;  %v3122_v34 = vadd.f32 %v962_v21, %v2997_v11  ;;  %v966_v35 = vpop.f32.mrf.mxu1  ;;  %v1014_v13 = vmul.f32 %v3113_v19, %v3113_v19 }
 0x255   : > { %v1137_v37 = vmax.f32 %v1121_v26, 0.0  ;;  %v1106_v38 = vmul.f32 %v2384_v27, %v3076_v52  ;;  %v3126_v41 = vadd.f32 %v966_v35, %v2993_v10  ;;  %vm1061_vm6 = vcmp.gt.f32.partialorder %v3119_v33, 0.0 }
 0x256   : > { %1200 = vst [vmem:[%s3129_s13] sm:$0xff] %v1168_v29  ;;  %1216 = vst [vmem:[%s3129_s13 + $0x8] sm:$0xff] %v1184_v30  ;;  %v1030_v15 = vmul.f32 %v3122_v34, %v3122_v34  ;;  %v968_v22 = vpop.f32.mrf.mxu1  ;;  %v1077_v45 = vsel %vm1061_vm6, %v3119_v33, 1.0 }
 0x257   : > { %v1153_v42 = vsel %vm1056_vm1, %v1137_v37, 0.0  ;;  %v1122_v43 = vsub.f32 1.0, %v1106_v38  ;;  %2391 = vrsqrt.f32 %v1077_v45  ;;  %v1015_v31 = vmul.f32 %v3126_v41, %v3126_v41 }
 0x258   : > { %v2386_v46 = vpop.eup %2385  ;;  %v1169_v49 = vmul.f32 %v1153_v42, %v3010_v20  ;;  %v1185_v50 = vmul.f32 %v1153_v42, %v3015_v23  ;;  %v3145_v25 = vadd.f32 %v1030_v15, %v1014_v13  ;;  %v970_v53 = vpop.f32.mrf.mxu1  ;;  %v3151_v58 = vadd.f32 %v968_v22, %v2997_v11 }
 0x259   : > { %v1138_v54 = vmax.f32 %v1122_v43, 0.0  ;;  %v1107_v57 = vmul.f32 %v2386_v46, %v3076_v52  ;;  %v3157_v20 = vadd.f32 %v970_v53, %v2993_v10 }
 0x25a   : > { %1201 = vst [vmem:[%s3129_s13 + $0x10] sm:$0xff] %v1169_v49  ;;  %1217 = vst [vmem:[%s3129_s13 + $0x18] sm:$0xff] %v1185_v50  ;;  %v1232_v59 = vpack.c.bf16 %v1169_v49, %v1168_v29  ;;  %vm1062_vm7 = vcmp.gt.f32.partialorder %v3145_v25, 0.0  ;;  %v972_v23 = vpop.f32.mrf.mxu1  ;;  %v1233_v60 = vpack.c.bf16 %v1185_v50, %v1184_v30  ;;  %v1031_v1 = vmul.f32 %v3151_v58, %v3151_v58 }
 0x25b   : > { %v1154_v61 = vsel %vm1057_vm2, %v1138_v54, 0.0  ;;  %v1123_v62 = vsub.f32 1.0, %v1107_v57  ;;  %v1078_v0 = vsel %vm1062_vm7, %v3145_v25, 1.0  ;;  %v3172_v18 = vadd.f32 %v972_v23, %v2997_v11 }
 0x25c   : > { %v2388_v3 = vpop.eup %2387  ;;  %v1170_v5 = vmul.f32 %v1154_v61, %v3023_v28  ;;  %v1186_v8 = vmul.f32 %v1154_v61, %v3033_v32  ;;  %2393 = vrsqrt.f32 %v1078_v0  ;;  %v976_v12 = vpop.f32.mrf.mxu1  ;;  %1415 = vmatprep.mubr.bf16.mxu0 %v1233_v60  ;;  %v3169_v17 = vadd.f32 %v1031_v1, %v1015_v31 }
 0x25d   : > { %v1139_v39 = vmax.f32 %v1123_v62, 0.0  ;;  %v1108_v14 = vmul.f32 %v2388_v3, %v3076_v52  ;;  %1416 = vmatmul.mubr.bf16.vlgmr.msra.gmra.mxu0 %v1232_v59  ;;  %v1016_v21 = vmul.f32 %v3157_v20, %v3157_v20  ;;  %v3179_v28 = vadd.f32 %v976_v12, %v2993_v10 }
 0x25e   : > { %1202 = vst [vmem:[%s3129_s13 + $0x20] sm:$0xff] %v1170_v5  ;;  %1218 = vst [vmem:[%s3129_s13 + $0x28] sm:$0xff] %v1186_v8  ;;  %v978_v32 = vpop.f32.mrf.mxu1  ;;  %vm1063_vm8 = vcmp.gt.f32.partialorder %v3169_v17, 0.0  ;;  %v1032_v27 = vmul.f32 %v3172_v18, %v3172_v18 }
 0x25f   : > { %v1155_v24 = vsel %vm1058_vm3, %v1139_v39, 0.0  ;;  %v1124_v26 = vsub.f32 1.0, %v1108_v14  ;;  %v1079_v37 = vsel %vm1063_vm8, %v3169_v17, 1.0  ;;  %v1017_v47 = vmul.f32 %v3179_v28, %v3179_v28 }
 0x260   : > { %v2390_v29 = vpop.eup %2389  ;;  %v1171_v30 = vmul.f32 %v1155_v24, %v3041_v36  ;;  %v1187_v35 = vmul.f32 %v1155_v24, %v3049_v40  ;;  %v980_v38 = vpop.f32.mrf.mxu1  ;;  %2395 = vrsqrt.f32 %v1079_v37  ;;  %v3194_v22 = vadd.f32 %v1032_v27, %v1016_v21 }
 0x261   : > { %v1140_v13 = vmax.f32 %v1124_v26, 0.0  ;;  %v1109_v15 = vmul.f32 %v2390_v29, %v3076_v52  ;;  %v3199_v36 = vadd.f32 %v978_v32, %v2997_v11  ;;  %v3202_v40 = vadd.f32 %v980_v38, %v2993_v10 }
 0x262   : > { %1203 = vst [vmem:[%s3129_s13 + $0x30] sm:$0xff] %v1171_v30  ;;  %1219 = vst [vmem:[%s3129_s13 + $0x38] sm:$0xff] %v1187_v35  ;;  %v982_v42 = vpop.f32.mrf.mxu1  ;;  %v1235_v43 = vpack.c.bf16 %v1187_v35, %v1186_v8  ;;  %v1234_v45 = vpack.c.bf16 %v1171_v30, %v1170_v5  ;;  %vm1064_vm9 = vcmp.gt.f32.partialorder %v3194_v22, 0.0 }
 0x263   : > { %v1156_v46 = vsel %vm1059_vm4, %v1140_v13, 0.0  ;;  %v1125_v49 = vsub.f32 1.0, %v1109_v15  ;;  %v3208_v50 = vadd.f32 %v982_v42, %v2997_v11  ;;  %v1080_v57 = vsel %vm1064_vm9, %v3194_v22, 1.0 }
 0x264   : > { %v1172_v53 = vmul.f32 %v1156_v46, %v3057_v44  ;;  %v1188_v54 = vmul.f32 %v1156_v46, %v3066_v48  ;;  %v1033_v55 = vmul.f32 %v3199_v36, %v3199_v36  ;;  %v986_v31 = vpop.f32.mrf.mxu1  ;;  %1423 = vmatprep.mubr.bf16.mxu0 %v1235_v43  ;;  %v2392_v59 = vpop.eup %2391  ;;  %2397 = vrsqrt.f32 %v1080_v57 }
 0x265   : > { %v1141_v23 = vmax.f32 %v1125_v49, 0.0  ;;  %v1018_v60 = vmul.f32 %v3202_v40, %v3202_v40  ;;  %v1034_v44 = vmul.f32 %v3208_v50, %v3208_v50  ;;  %1424 = vmatmul.mubr.bf16.gmra.mxu0 %v1234_v45  ;;  %v1110_v48 = vmul.f32 %v2392_v59, %v3076_v52 }
 0x266   : > { %1204 = vst [vmem:[%s3129_s13 + $0x40] sm:$0xff] %v1172_v53  ;;  %1220 = vst [vmem:[%s3129_s13 + $0x48] sm:$0xff] %v1188_v54  ;;  %v3224_v61 = vadd.f32 %v1033_v55, %v1017_v47  ;;  %v3227_v62 = vadd.f32 %v986_v31, %v2993_v10  ;;  %v988_v0 = vpop.f32.mrf.mxu1 }
 0x267   : > { %v1157_v1 = vsel %vm1060_vm5, %v1141_v23, 0.0  ;;  %v3231_v3 = vadd.f32 %v1034_v44, %v1018_v60  ;;  %v3234_v5 = vadd.f32 %v988_v0, %v2997_v11  ;;  %v1126_v39 = vsub.f32 1.0, %v1110_v48 }
 0x268   : > { %v1173_v8 = vmul.f32 %v1157_v1, %v3074_v51  ;;  %v1189_v12 = vmul.f32 %v1157_v1, %v3084_v56  ;;  %vm1065_vm10 = vcmp.gt.f32.partialorder %v3224_v61, 0.0  ;;  %v990_v14 = vpop.f32.mrf.mxu1  ;;  %v1019_v2 = vmul.f32 %v3227_v62, %v3227_v62 }
 0x269   : > { %v2394_v21 = vpop.eup %2393  ;;  %v1081_v32 = vsel %vm1065_vm10, %v3224_v61, 1.0  ;;  %vm1066_vm11 = vcmp.gt.f32.partialorder %v3231_v3, 0.0  ;;  %v1035_v24 = vmul.f32 %v3234_v5, %v3234_v5  ;;  %v1142_v51 = vmax.f32 %v1126_v39, 0.0 }
 0x26a   : > { %1205 = vst [vmem:[%s3129_s13 + $0x50] sm:$0xff] %v1173_v8  ;;  %1221 = vst [vmem:[%s3129_s13 + $0x58] sm:$0xff] %v1189_v12  ;;  %v1111_v56 = vmul.f32 %v2394_v21, %v3076_v52  ;;  %2399 = vrsqrt.f32 %v1081_v32  ;;  %v1082_v26 = vsel %vm1066_vm11, %v3231_v3, 1.0  ;;  %v992_v27 = vpop.f32.mrf.mxu1  ;;  %v3256_v30 = vadd.f32 %v990_v14, %v2993_v10 }
 0x26b   : > { %2401 = vrsqrt.f32 %v1082_v26  ;;  %v3253_v29 = vadd.f32 %v1035_v24, %v1019_v2  ;;  %v3259_v35 = vadd.f32 %v992_v27, %v2997_v11  ;;  %v1158_v37 = vsel %vm1061_vm6, %v1142_v51, 0.0 }
 0x26c   : > { %v1127_v47 = vsub.f32 1.0, %v1111_v56  ;;  %v996_v38 = vpop.f32.mrf.mxu1  ;;  %v1237_v13 = vpack.c.bf16 %v1189_v12, %v1188_v54  ;;  %v1236_v15 = vpack.c.bf16 %v1173_v8, %v1172_v53  ;;  %v1174_v42 = vmul.f32 %v1158_v37, %v3096_v63 }
 0x26d   : > { %v1190_v43 = vmul.f32 %v1158_v37, %v3101_v4  ;;  %vm1067_vm12 = vcmp.gt.f32.partialorder %v3253_v29, 0.0  ;;  %v1020_v45 = vmul.f32 %v3256_v30, %v3256_v30  ;;  %v2396_v46 = vpop.eup %2395  ;;  %v1036_v57 = vmul.f32 %v3259_v35, %v3259_v35 }
 0x26e   : > { %v1143_v49 = vmax.f32 %v1127_v47, 0.0  ;;  %v1083_v33 = vsel %vm1067_vm12, %v3253_v29, 1.0  ;;  %v3274_v53 = vadd.f32 %v996_v38, %v2993_v10  ;;  %1431 = vmatprep.mubr.bf16.mxu0 %v1237_v13  ;;  %v998_v63 = vpop.f32.mrf.mxu1  ;;  %1206 = vst [vmem:[%s3129_s13 + $0x60] sm:$0xff] %v1174_v42  ;;  %v1112_v4 = vmul.f32 %v2396_v46, %v3076_v52 }
 0x26f   : > { %1222 = vst [vmem:[%s3129_s13 + $0x68] sm:$0xff] %v1190_v43  ;;  %2403 = vrsqrt.f32 %v1083_v33  ;;  %1432 = vmatmul.mubr.bf16.gmra.mxu0 %v1236_v15  ;;  %v3280_v54 = vadd.f32 %v998_v63, %v2997_v11  ;;  %v3284_v31 = vadd.f32 %v1036_v57, %v1020_v45 }
 0x270   : > { %v1159_v55 = vsel %vm1062_vm7, %v1143_v49, 0.0  ;;  %v1021_v59 = vmul.f32 %v3274_v53, %v3274_v53  ;;  %v1000_v23 = vpop.f32.mrf.mxu1  ;;  %v1128_v48 = vsub.f32 1.0, %v1112_v4 }
 0x271   : > { %v1175_v60 = vmul.f32 %v1159_v55, %v3113_v19  ;;  %v1191_v44 = vmul.f32 %v1159_v55, %v3122_v34  ;;  %v1037_v0 = vmul.f32 %v3280_v54, %v3280_v54  ;;  %v2398_v1 = vpop.eup %2397  ;;  %vm1068_vm13 = vcmp.gt.f32.partialorder %v3284_v31, 0.0 }
 0x272   : > { %v3294_v25 = vadd.f32 %v1000_v23, %v2993_v10  ;;  %v1002_v8 = vpop.f32.mrf.mxu1  ;;  %v1144_v12 = vmax.f32 %v1128_v48, 0.0  ;;  %v1113_v39 = vmul.f32 %v2398_v1, %v3076_v52  ;;  %v1084_v19 = vsel %vm1068_vm13, %v3284_v31, 1.0 }
 0x273   : > { %1207 = vst [vmem:[%s3129_s13 + $0x70] sm:$0xff] %v1175_v60  ;;  %1223 = vst [vmem:[%s3129_s13 + $0x78] sm:$0xff] %v1191_v44  ;;  %v3302_v34 = vadd.f32 %v1037_v0, %v1021_v59  ;;  %2405 = vrsqrt.f32 %v1084_v19  ;;  %v3307_v21 = vadd.f32 %v1002_v8, %v2997_v11  ;;  %v1239_v10 = vpack.c.bf16 %v1191_v44, %v1190_v43 }
 0x274   : > { %v1022_v14 = vmul.f32 %v3294_v25, %v3294_v25  ;;  %v1160_v32 = vsel %vm1063_vm8, %v1144_v12, 0.0  ;;  %v1129_v2 = vsub.f32 1.0, %v1113_v39  ;;  %v1238_v24 = vpack.c.bf16 %v1175_v60, %v1174_v42 }
 0x275   : > { %vm1069_vm14 = vcmp.gt.f32.partialorder %v3302_v34, 0.0  ;;  %v1176_v51 = vmul.f32 %v1160_v32, %v3126_v41  ;;  %v1192_v56 = vmul.f32 %v1160_v32, %v3151_v58  ;;  %v1038_v11 = vmul.f32 %v3307_v21, %v3307_v21  ;;  %1439 = vmatprep.mubr.bf16.mxu0 %v1239_v10 }
 0x276   : > { %v1085_v26 = vsel %vm1069_vm14, %v3302_v34, 1.0  ;;  %v1145_v17 = vmax.f32 %v1129_v2, 0.0 }
 0x277   : > { %v2400_v27 = vpop.eup %2399  ;;  %2407 = vrsqrt.f32 %v1085_v26  ;;  %1440 = vmatmul.mubr.bf16.gmra.mxu0 %v1238_v24  ;;  %1208 = vst [vmem:[%s3129_s13 + $0x80] sm:$0xff] %v1176_v51  ;;  %1224 = vst [vmem:[%s3129_s13 + $0x88] sm:$0xff] %v1192_v56  ;;  %v3322_v58 = vadd.f32 %v1038_v11, %v1022_v14 }
 0x278   : > { %v2402_v37 = vpop.eup %2401  ;;  %v1114_v41 = vmul.f32 %v2400_v27, %v3076_v52  ;;  %v1161_v47 = vsel %vm1064_vm9, %v1145_v17, 0.0  ;;  %v2341_v27 = vld [vmem:[#allocation11 + $0x10] ss:$8 sps:$4 sm:$0xff]   ;;  %v2343_v17 = vld [vmem:[#allocation11 + $0x14] ss:$8 sps:$4 sm:$0xff]  }
 0x279   : > { %v1115_v38 = vmul.f32 %v2402_v37, %v3076_v52  ;;  %v1177_v13 = vmul.f32 %v1161_v47, %v3157_v20  ;;  %v1193_v15 = vmul.f32 %v1161_v47, %v3172_v18  ;;  %vm1070_vm15 = vcmp.gt.f32.partialorder %v3322_v58, 0.0  ;;  %v2346_v37 = vld [vmem:[#allocation11 + $0x4] ss:$8 sps:$4 sm:$0xff]  }
 0x27a   : > { %v1130_v42 = vsub.f32 1.0, %v1114_v41  ;;  %v1086_v45 = vsel %vm1070_vm15, %v3322_v58, 1.0  ;;  %v2344_v41 = vld [vmem:[#allocation11] ss:$8 sps:$4 sm:$0xff]  }
 0x27b   : > { %v1131_v43 = vsub.f32 1.0, %v1115_v38  ;;  %1209 = vst [vmem:[%s3129_s13 + $0x90] sm:$0xff] %v1177_v13  ;;  %1225 = vst [vmem:[%s3129_s13 + $0x98] sm:$0xff] %v1193_v15  ;;  %2409 = vrsqrt.f32 %v1086_v45  ;;  %v1241_v22 = vpack.c.bf16 %v1193_v15, %v1192_v56  ;;  %v1240_v33 = vpack.c.bf16 %v1177_v13, %v1176_v51  ;;  %v3378_v58 = vld [vmem:[%s3576_s6] ss:$0 sm:$0xff] }
 0x27c   : > { %v2404_v46 = vpop.eup %2403  ;;  %v1146_v49 = vmax.f32 %v1130_v42, 0.0 }
 0x27d   : > { %v1147_v20 = vmax.f32 %v1131_v43, 0.0  ;;  %v1116_v18 = vmul.f32 %v2404_v46, %v3076_v52  ;;  %1447 = vmatprep.mubr.bf16.mxu0 %v1241_v22 }
 0x27e   : > { %v1162_v57 = vsel %vm1065_vm10, %v1146_v49, 0.0 }
 0x27f   : > { %v1178_v63 = vmul.f32 %v1162_v57, %v3179_v28  ;;  %v1194_v4 = vmul.f32 %v1162_v57, %v3199_v36  ;;  %v1163_v55 = vsel %vm1066_vm11, %v1147_v20, 0.0  ;;  %v1132_v59 = vsub.f32 1.0, %v1116_v18  ;;  %1448 = vmatmul.mubr.bf16.gmra.mxu0 %v1240_v33 }
 0x280   : > { %v1179_v23 = vmul.f32 %v1163_v55, %v3202_v40  ;;  %v1195_v60 = vmul.f32 %v1163_v55, %v3208_v50  ;;  %v2406_v44 = vpop.eup %2405 }
 0x281   : > { %1210 = vst [vmem:[%s3129_s13 + $0xa0] sm:$0xff] %v1178_v63  ;;  %1226 = vst [vmem:[%s3129_s13 + $0xa8] sm:$0xff] %v1194_v4  ;;  %v1148_v61 = vmax.f32 %v1132_v59, 0.0  ;;  %v1117_v28 = vmul.f32 %v2406_v44, %v3076_v52 }
 0x282   : > { %1211 = vst [vmem:[%s3129_s13 + $0xb0] sm:$0xff] %v1179_v23  ;;  %1227 = vst [vmem:[%s3129_s13 + $0xb8] sm:$0xff] %v1195_v60  ;;  %v1243_v36 = vpack.c.bf16 %v1195_v60, %v1194_v4  ;;  %v1242_v48 = vpack.c.bf16 %v1179_v23, %v1178_v63 }
 0x283   : > { %v1164_v3 = vsel %vm1067_vm12, %v1148_v61, 0.0  ;;  %v1133_v1 = vsub.f32 1.0, %v1117_v28 }
 0x284   : > { %v2408_v0 = vpop.eup %2407  ;;  %v1180_v40 = vmul.f32 %v1164_v3, %v3227_v62  ;;  %v1196_v50 = vmul.f32 %v1164_v3, %v3234_v5  ;;  %1455 = vmatprep.mubr.bf16.mxu0 %v1243_v36 }
 0x285   : > { %v1118_v8 = vmul.f32 %v2408_v0, %v3076_v52  ;;  %v1149_v12 = vmax.f32 %v1133_v1, 0.0 }
 0x286   : > { %1212 = vst [vmem:[%s3129_s13 + $0xc0] sm:$0xff] %v1180_v40  ;;  %1228 = vst [vmem:[%s3129_s13 + $0xc8] sm:$0xff] %v1196_v50 }
 0x287   : > { %v1134_v39 = vsub.f32 1.0, %v1118_v8  ;;  %1456 = vmatmul.mubr.bf16.gmra.mxu0 %v1242_v48  ;;  %v1165_v29 = vsel %vm1068_vm13, %v1149_v12, 0.0 }
 0x288   : > { %v2410_v19 = vpop.eup %2409  ;;  %v1181_v62 = vmul.f32 %v1165_v29, %v3256_v30  ;;  %v1197_v5 = vmul.f32 %v1165_v29, %v3259_v35 }
 0x289   : > { %v1150_v14 = vmax.f32 %v1134_v39, 0.0  ;;  %v1119_v10 = vmul.f32 %v2410_v19, %v3076_v52 }
 0x28a   : > { %1213 = vst [vmem:[%s3129_s13 + $0xd0] sm:$0xff] %v1181_v62  ;;  %1229 = vst [vmem:[%s3129_s13 + $0xd8] sm:$0xff] %v1197_v5  ;;  %v1245_v2 = vpack.c.bf16 %v1197_v5, %v1196_v50  ;;  %v1244_v31 = vpack.c.bf16 %v1181_v62, %v1180_v40 }
 0x28b   : > { %v1166_v32 = vsel %vm1069_vm14, %v1150_v14, 0.0  ;;  %v1135_v56 = vsub.f32 1.0, %v1119_v10 }
 0x28c   : > { %v1182_v24 = vmul.f32 %v1166_v32, %v3274_v53  ;;  %v1198_v51 = vmul.f32 %v1166_v32, %v3280_v54  ;;  %1463 = vmatprep.mubr.bf16.mxu0 %v1245_v2  ;;  %v2338_v53 = vld [vmem:[#allocation11 + $0x20] ss:$8 sps:$4 sm:$0xff]   ;;  %v2340_v54 = vld [vmem:[#allocation11 + $0x24] ss:$8 sps:$4 sm:$0xff]  }
 0x28d   : > { %v1151_v30 = vmax.f32 %v1135_v56, 0.0  ;;  %1622 = vmatprep.subr.bf16.mxu1 %v2340_v54 }
 0x28e   : > { %1214 = vst [vmem:[%s3129_s13 + $0xe0] sm:$0xff] %v1182_v24  ;;  %1230 = vst [vmem:[%s3129_s13 + $0xe8] sm:$0xff] %v1198_v51  ;;  %1623 = vmatpush1.bf16.msra.mxu1 %v2338_v53 }
 0x28f   : > { %1464 = vmatmul.mubr.bf16.gmra.mxu0 %v1244_v31  ;;  %v1167_v52 = vsel %vm1070_vm15, %v1151_v30, 0.0  ;;  %1624 = vmatprep.subr.bf16.mxu1 %v2343_v17 }
 0x290   : > { %v1183_v35 = vmul.f32 %v1167_v52, %v3294_v25  ;;  %v1199_v34 = vmul.f32 %v1167_v52, %v3307_v21 }
 0x292   : > { %1215 = vst [vmem:[%s3129_s13 + $0xf0] sm:$0xff] %v1183_v35  ;;  %1231 = vst [vmem:[%s3129_s13 + $0xf8] sm:$0xff] %v1199_v34  ;;  %v1247_v26 = vpack.c.bf16 %v1199_v34, %v1198_v51  ;;  %v1246_v11 = vpack.c.bf16 %v1183_v35, %v1182_v24  ;;  %1625 = vmatpush1.bf16.msra.mxu1 %v2341_v27 }
 0x293   : > { %1626 = vmatprep.subr.bf16.mxu1 %v2346_v37 }
 0x294   : > { %1471 = vmatprep.mubr.bf16.mxu0 %v1247_v26 }
 0x296   : > { %1627 = vmatpush1.bf16.msra.mxu1 %v2344_v41 }
 0x297   : > { %1472 = vmatmul.mubr.bf16.gmra.mxu0 %v1246_v11 }
 0x31d   : > { %v2118_v25 = vpop.f32.mrf.mxu0 }
 0x31f   : > { %v2119_v21 = vpop.f32.mrf.mxu0 }
 0x320   : > { %v2120_v47 = vadd.f32 %v2119_v21, %v2118_v25 }
 0x321   : > { %v2121_v38 = vpop.f32.mrf.mxu0 }
 0x322   : > { %v1418_v13 = vadd.f32 %v2120_v47, %v3378_v58 }
 0x323   : > { %v2122_v15 = vpop.f32.mrf.mxu0 }
 0x324   : > { %v2123_v42 = vadd.f32 %v2122_v15, %v2121_v38  ;;  %2411 = vtanh.f32 %v1418_v13 }
 0x325   : > { %v2124_v43 = vpop.f32.mrf.mxu0 }
 0x326   : > { %v1421_v45 = vadd.f32 %v2123_v42, %v3378_v58 }
 0x327   : > { %v2125_v46 = vpop.f32.mrf.mxu0 }
 0x328   : > { %2413 = vtanh.f32 %v1421_v45  ;;  %v2126_v49 = vadd.f32 %v2125_v46, %v2124_v43 }
 0x329   : > { %v2127_v22 = vpop.f32.mrf.mxu0 }
 0x32a   : > { %v1426_v33 = vadd.f32 %v2126_v49, %v3378_v58 }
 0x32b   : > { %v2128_v20 = vpop.f32.mrf.mxu0 }
 0x32c   : > { %v2129_v18 = vadd.f32 %v2128_v20, %v2127_v22  ;;  %2415 = vtanh.f32 %v1426_v33 }
 0x32e   : > { %v1429_v57 = vadd.f32 %v2129_v18, %v3378_v58 }
 0x32f   : > { %v2130_v63 = vpop.f32.mrf.mxu0 }
 0x330   : > { %2417 = vtanh.f32 %v1429_v57 }
 0x331   : > { %v2131_v4 = vpop.f32.mrf.mxu0  ;;  %v2412_v23 = vpop.eup %2411 }
 0x332   : > { %v2132_v55 = vadd.f32 %v2131_v4, %v2130_v63 }
 0x333   : > { %v2133_v59 = vpop.f32.mrf.mxu0 }
 0x334   : > { %v1434_v44 = vadd.f32 %v2132_v55, %v3378_v58 }
 0x335   : > { %v2414_v60 = vpop.eup %2413  ;;  %v2134_v61 = vpop.f32.mrf.mxu0 }
 0x336   : > { %v2135_v28 = vadd.f32 %v2134_v61, %v2133_v59  ;;  %v1496_v36 = vpack.c.bf16 %v2414_v60, %v2412_v23  ;;  %2419 = vtanh.f32 %v1434_v44 }
 0x337   : > { %v2136_v3 = vpop.f32.mrf.mxu0 }
 0x338   : > { %v1437_v48 = vadd.f32 %v2135_v28, %v3378_v58  ;;  %1645 = vmatmul.mubr.bf16.vlgmr.msra.gmra.mxu1 %v1496_v36 }
 0x339   : > { %v2137_v0 = vpop.f32.mrf.mxu0  ;;  %1654 = vmatprep.mubr.bf16.mxu1 %v2690_v16  ;;  %v2416_v1 = vpop.eup %2415 }
 0x33a   : > { %2421 = vtanh.f32 %v1437_v48  ;;  %v2138_v40 = vadd.f32 %v2137_v0, %v2136_v3 }
 0x33b   : > { %v2139_v50 = vpop.f32.mrf.mxu0 }
 0x33c   : > { %v1442_v12 = vadd.f32 %v2138_v40, %v3378_v58 }
 0x33d   : > { %v2418_v8 = vpop.eup %2417  ;;  %v2140_v39 = vpop.f32.mrf.mxu0 }
 0x33e   : > { %v2141_v29 = vadd.f32 %v2140_v39, %v2139_v50  ;;  %v1497_v19 = vpack.c.bf16 %v2418_v8, %v2416_v1  ;;  %2423 = vtanh.f32 %v1442_v12 }
 0x33f   : > { %v2142_v62 = vpop.f32.mrf.mxu0 }
 0x340   : > { %v1445_v5 = vadd.f32 %v2141_v29, %v3378_v58  ;;  %1655 = vmatmul.mubr.bf16.gmra.mxu1 %v1497_v19 }
 0x341   : > { %v2143_v14 = vpop.f32.mrf.mxu0  ;;  %1664 = vmatprep.mubr.bf16.mxu1 %v2690_v16 }
 0x342   : > { %2425 = vtanh.f32 %v1445_v5  ;;  %v2144_v10 = vadd.f32 %v2143_v14, %v2142_v62 }
 0x343   : > { %v2145_v32 = vpop.f32.mrf.mxu0  ;;  %v2420_v24 = vpop.eup %2419 }
 0x344   : > { %v1450_v2 = vadd.f32 %v2144_v10, %v3378_v58 }
 0x345   : > { %v2146_v31 = vpop.f32.mrf.mxu0 }
 0x346   : > { %v2147_v51 = vadd.f32 %v2146_v31, %v2145_v32  ;;  %2427 = vtanh.f32 %v1450_v2 }
 0x347   : > { %v2422_v56 = vpop.eup %2421  ;;  %v2148_v30 = vpop.f32.mrf.mxu0 }
 0x348   : > { %v1453_v52 = vadd.f32 %v2147_v51, %v3378_v58  ;;  %v1498_v35 = vpack.c.bf16 %v2422_v56, %v2420_v24 }
 0x349   : > { %v2149_v34 = vpop.f32.mrf.mxu0 }
 0x34a   : > { %2429 = vtanh.f32 %v1453_v52  ;;  %v2150_v26 = vadd.f32 %v2149_v34, %v2148_v30  ;;  %1665 = vmatmul.mubr.bf16.gmra.mxu1 %v1498_v35 }
 0x34b   : > { %v2151_v11 = vpop.f32.mrf.mxu0  ;;  %1674 = vmatprep.mubr.bf16.mxu1 %v2690_v16  ;;  %v2424_v27 = vpop.eup %2423 }
 0x34c   : > { %v1458_v53 = vadd.f32 %v2150_v26, %v3378_v58 }
 0x34d   : > { %v2152_v54 = vpop.f32.mrf.mxu0 }
 0x34e   : > { %v2153_v17 = vadd.f32 %v2152_v54, %v2151_v11  ;;  %2431 = vtanh.f32 %v1458_v53 }
 0x34f   : > { %v2426_v37 = vpop.eup %2425  ;;  %v2154_v41 = vpop.f32.mrf.mxu0 }
 0x350   : > { %v1461_v25 = vadd.f32 %v2153_v17, %v3378_v58  ;;  %v1499_v21 = vpack.c.bf16 %v2426_v37, %v2424_v27 }
 0x351   : > { %v2155_v47 = vpop.f32.mrf.mxu0 }
 0x352   : > { %2433 = vtanh.f32 %v1461_v25  ;;  %v2156_v38 = vadd.f32 %v2155_v47, %v2154_v41  ;;  %1675 = vmatmul.mubr.bf16.gmra.mxu1 %v1499_v21 }
 0x353   : > { %v2157_v13 = vpop.f32.mrf.mxu0  ;;  %1684 = vmatprep.mubr.bf16.mxu1 %v2690_v16  ;;  %v2428_v43 = vpop.eup %2427 }
 0x354   : > { %v1466_v15 = vadd.f32 %v2156_v38, %v3378_v58 }
 0x355   : > { %v2158_v42 = vpop.f32.mrf.mxu0 }
 0x356   : > { %v2159_v45 = vadd.f32 %v2158_v42, %v2157_v13  ;;  %2435 = vtanh.f32 %v1466_v15 }
 0x357   : > { %v2430_v46 = vpop.eup %2429  ;;  %v2160_v49 = vpop.f32.mrf.mxu0 }
 0x358   : > { %v1469_v22 = vadd.f32 %v2159_v45, %v3378_v58  ;;  %v1500_v33 = vpack.c.bf16 %v2430_v46, %v2428_v43 }
 0x359   : > { %v2161_v20 = vpop.f32.mrf.mxu0 }
 0x35a   : > { %2437 = vtanh.f32 %v1469_v22  ;;  %v2162_v18 = vadd.f32 %v2161_v20, %v2160_v49  ;;  %1685 = vmatmul.mubr.bf16.gmra.mxu1 %v1500_v33 }
 0x35b   : > { %v2163_v57 = vpop.f32.mrf.mxu0  ;;  %1694 = vmatprep.mubr.bf16.mxu1 %v2690_v16  ;;  %v2432_v55 = vpop.eup %2431 }
 0x35c   : > { %v1474_v63 = vadd.f32 %v2162_v18, %v3378_v58 }
 0x35d   : > { %v2164_v4 = vpop.f32.mrf.mxu0 }
 0x35e   : > { %v2165_v59 = vadd.f32 %v2164_v4, %v2163_v57  ;;  %2439 = vtanh.f32 %v1474_v63 }
 0x35f   : > { %v2434_v23 = vpop.eup %2433 }
 0x360   : > { %v1477_v60 = vadd.f32 %v2165_v59, %v3378_v58  ;;  %v1501_v44 = vpack.c.bf16 %v2434_v23, %v2432_v55 }
 0x362   : > { %2441 = vtanh.f32 %v1477_v60  ;;  %1695 = vmatmul.mubr.bf16.gmra.mxu1 %v1501_v44 }
 0x363   : > { %1704 = vmatprep.mubr.bf16.mxu1 %v2690_v16  ;;  %v2436_v61 = vpop.eup %2435 }
 0x367   : > { %v2438_v28 = vpop.eup %2437 }
 0x368   : > { %v1502_v36 = vpack.c.bf16 %v2438_v28, %v2436_v61 }
 0x36a   : > { %1705 = vmatmul.mubr.bf16.gmra.mxu1 %v1502_v36 }
 0x36b   : > { %1714 = vmatprep.mubr.bf16.mxu1 %v2690_v16  ;;  %v2440_v3 = vpop.eup %2439 }
 0x36f   : > { %v2442_v48 = vpop.eup %2441 }
 0x370   : > { %v1503_v0 = vpack.c.bf16 %v2442_v48, %v2440_v3 }
 0x372   : > { %1715 = vmatmul.mubr.bf16.gmra.mxu1 %v1503_v0 }
 0x373   : > { %2588 = shalt.err (!%p2585_p3)
}
 0x374   : > { %s2589_s13 = scalar_lea.hbm %s3409_s16, 4096  ;;  %s2593_s18 = scalar_lea.hbm %s3581_s11, 8192 }
 0x375   : > { %p2590_p4 = scmp.ne.s32.totalorder %s3409_s16, %s2589_s13  ;;  %p2594_p11 = scmp.lt.s32.totalorder %s3409_s16, %s3581_s11 }
 0x376   : > { %p2595_p10 = scmp.lt.s32.totalorder %s2593_s18, %s2589_s13 }
 0x377   : > { %p2591_p8 = pnand %p2590_p4, %p3607_p1 }
 0x378   : > { %p2596_p7 = por %p2595_p10, %p2594_p11 }
 0x379   : > { %p2592_p2 = pneg %p2591_p8 }
 0x37b   : > { %p2597_p12 = pnand %p2596_p7, %p2592_p2 }
 0x37d   : > { %2600 = shalt.err (!%p2597_p12)
}
 0x37e   : > { %s2692_s26 = smov 256   ;;  %s2693_s29 = smov 16   ;;  %v1520_v16 = vld [vmem:[%s3578_s8] sm:$0x3] }
 0x37f   : > { %2185 = dma.vmem_to_hbm [thread:$0]  (%p3607_p1), %s3412_s1, 4096, %s3409_s16, %s1763_s24, %s2692_s26, %s2692_s26, %s2693_s29   ;;  %v3445_v58 = vrot.slane %v1520_v16, %v804_v7  ;;  %v3449_v40 = vrot.slane %v1520_v16, %v808_v9 }
 0x380   : > { %s3453_s13 = scalar_lea.vmem [#allocation12], %s2904_s7  ;;  %s3523_s24 = scalar_lea.hbm %s3580_s10, %s2035_s3 }
 0x381   : > { %s1777_s7 = sshll.u32 %s3453_s13, 4  ;;  %s1758_s15 = scalar_lea.sflag [#allocation5], %s2901_s5  ;;  %s3525_s7 = int_to_ptr.vmem [resolvable:$true] %s1777_s7 }
 0x382   : > { %s2601_s18 = scalar_lea.vmem %s3525_s7, 4096  ;;  %s2694_s17 = smov [#allocation12]  }
 0x383   : > { %p2602_p9 = scmp.ne.s32.totalorder %s3525_s7, %s2601_s18  ;;  %s2605_s30 = sshll.u32 %s2694_s17, 4  ;;  %s2606_s30 = int_to_ptr.vmem [resolvable:$false] %s2605_s30 }
 0x384   : > { %s2607_s9 = scalar_lea.vmem %s2606_s30, 8192  ;;  %p2608_p0 = scmp.lt.s32.totalorder %s3525_s7, %s2606_s30 }
 0x385   : > { %p2603_p13 = pnand %p2602_p9, %p3607_p1  ;;  %p2609_p5 = scmp.lt.s32.totalorder %s2607_s9, %s2601_s18 }
 0x387   : > { %p2604_p6 = pneg %p2603_p13  ;;  %p2610_p3 = por %p2609_p5, %p2608_p0 }
 0x389   : > { %p2611_p4 = pnand %p2610_p3, %p2604_p6 }
 0x3f8   : > { %v1646_v50 = vpop.f32.mrf.mxu1 }
 0x3f9   : > { %v1647_v1 = vadd.f32 %v1646_v50, %v3445_v58 }
 0x3fa   : > { %v1648_v8 = vpop.f32.mrf.mxu1 }
 0x3fb   : > { %1725 = vst [vmem:[%s3453_s13] sm:$0xff] %v1647_v1  ;;  %v1649_v7 = vadd.f32 %v1648_v8, %v3449_v40 }
 0x3fc   : > { %v1650_v12 = vpop.f32.mrf.mxu1 }
 0x3fd   : > { %1726 = vst [vmem:[%s3453_s13 + $0x8] sm:$0xff] %v1649_v7  ;;  %v1651_v6 = vadd.f32 %v1650_v12, %v3445_v58 }
 0x3fe   : > { %v1652_v9 = vpop.f32.mrf.mxu1 }
 0x3ff   : > { %1727 = vst [vmem:[%s3453_s13 + $0x10] sm:$0xff] %v1651_v6  ;;  %v1653_v39 = vadd.f32 %v1652_v9, %v3449_v40 }
 0x400   : > { %v1656_v29 = vpop.f32.mrf.mxu1 }
 0x401   : > { %1728 = vst [vmem:[%s3453_s13 + $0x18] sm:$0xff] %v1653_v39  ;;  %v1657_v19 = vadd.f32 %v1656_v29, %v3445_v58 }
 0x402   : > { %v1658_v62 = vpop.f32.mrf.mxu1 }
 0x403   : > { %1729 = vst [vmem:[%s3453_s13 + $0x20] sm:$0xff] %v1657_v19  ;;  %v1659_v5 = vadd.f32 %v1658_v62, %v3449_v40 }
 0x404   : > { %v1660_v14 = vpop.f32.mrf.mxu1 }
 0x405   : > { %1730 = vst [vmem:[%s3453_s13 + $0x28] sm:$0xff] %v1659_v5  ;;  %v1661_v10 = vadd.f32 %v1660_v14, %v3445_v58 }
 0x406   : > { %v1662_v32 = vpop.f32.mrf.mxu1 }
 0x407   : > { %1731 = vst [vmem:[%s3453_s13 + $0x30] sm:$0xff] %v1661_v10  ;;  %v1663_v2 = vadd.f32 %v1662_v32, %v3449_v40 }
 0x409   : > { %1732 = vst [vmem:[%s3453_s13 + $0x38] sm:$0xff] %v1663_v2 }
 0x40a   : > { %v1666_v31 = vpop.f32.mrf.mxu1 }
 0x40b   : > { %v1667_v24 = vadd.f32 %v1666_v31, %v3445_v58 }
 0x40c   : > { %v1668_v51 = vpop.f32.mrf.mxu1 }
 0x40d   : > { %1733 = vst [vmem:[%s3453_s13 + $0x40] sm:$0xff] %v1667_v24  ;;  %v1669_v56 = vadd.f32 %v1668_v51, %v3449_v40 }
 0x40e   : > { %v1670_v30 = vpop.f32.mrf.mxu1 }
 0x40f   : > { %1734 = vst [vmem:[%s3453_s13 + $0x48] sm:$0xff] %v1669_v56  ;;  %v1671_v52 = vadd.f32 %v1670_v30, %v3445_v58 }
 0x410   : > { %v1672_v35 = vpop.f32.mrf.mxu1 }
 0x411   : > { %1735 = vst [vmem:[%s3453_s13 + $0x50] sm:$0xff] %v1671_v52  ;;  %v1673_v34 = vadd.f32 %v1672_v35, %v3449_v40 }
 0x412   : > { %v1676_v26 = vpop.f32.mrf.mxu1 }
 0x413   : > { %1736 = vst [vmem:[%s3453_s13 + $0x58] sm:$0xff] %v1673_v34  ;;  %v1677_v11 = vadd.f32 %v1676_v26, %v3445_v58 }
 0x414   : > { %v1678_v53 = vpop.f32.mrf.mxu1 }
 0x415   : > { %1737 = vst [vmem:[%s3453_s13 + $0x60] sm:$0xff] %v1677_v11  ;;  %v1679_v54 = vadd.f32 %v1678_v53, %v3449_v40 }
 0x416   : > { %v1680_v27 = vpop.f32.mrf.mxu1 }
 0x417   : > { %1738 = vst [vmem:[%s3453_s13 + $0x68] sm:$0xff] %v1679_v54  ;;  %v1681_v17 = vadd.f32 %v1680_v27, %v3445_v58 }
 0x418   : > { %v1682_v37 = vpop.f32.mrf.mxu1 }
 0x419   : > { %1739 = vst [vmem:[%s3453_s13 + $0x70] sm:$0xff] %v1681_v17  ;;  %v1683_v41 = vadd.f32 %v1682_v37, %v3449_v40 }
 0x41a   : > { %v1686_v25 = vpop.f32.mrf.mxu1 }
 0x41b   : > { %1740 = vst [vmem:[%s3453_s13 + $0x78] sm:$0xff] %v1683_v41  ;;  %v1687_v21 = vadd.f32 %v1686_v25, %v3445_v58 }
 0x41c   : > { %v1688_v47 = vpop.f32.mrf.mxu1 }
 0x41d   : > { %1741 = vst [vmem:[%s3453_s13 + $0x80] sm:$0xff] %v1687_v21  ;;  %v1689_v38 = vadd.f32 %v1688_v47, %v3449_v40 }
 0x41e   : > { %v1690_v13 = vpop.f32.mrf.mxu1 }
 0x41f   : > { %1742 = vst [vmem:[%s3453_s13 + $0x88] sm:$0xff] %v1689_v38  ;;  %v1691_v15 = vadd.f32 %v1690_v13, %v3445_v58 }
 0x420   : > { %v1692_v42 = vpop.f32.mrf.mxu1 }
 0x421   : > { %1743 = vst [vmem:[%s3453_s13 + $0x90] sm:$0xff] %v1691_v15  ;;  %v1693_v43 = vadd.f32 %v1692_v42, %v3449_v40 }
 0x422   : > { %v1696_v45 = vpop.f32.mrf.mxu1 }
 0x423   : > { %1744 = vst [vmem:[%s3453_s13 + $0x98] sm:$0xff] %v1693_v43  ;;  %v1697_v46 = vadd.f32 %v1696_v45, %v3445_v58 }
 0x424   : > { %v1698_v49 = vpop.f32.mrf.mxu1 }
 0x425   : > { %1745 = vst [vmem:[%s3453_s13 + $0xa0] sm:$0xff] %v1697_v46  ;;  %v1699_v22 = vadd.f32 %v1698_v49, %v3449_v40 }
 0x426   : > { %v1700_v33 = vpop.f32.mrf.mxu1 }
 0x427   : > { %1746 = vst [vmem:[%s3453_s13 + $0xa8] sm:$0xff] %v1699_v22  ;;  %v1701_v20 = vadd.f32 %v1700_v33, %v3445_v58 }
 0x428   : > { %v1702_v18 = vpop.f32.mrf.mxu1 }
 0x429   : > { %1747 = vst [vmem:[%s3453_s13 + $0xb0] sm:$0xff] %v1701_v20  ;;  %v1703_v57 = vadd.f32 %v1702_v18, %v3449_v40 }
 0x42a   : > { %v1706_v63 = vpop.f32.mrf.mxu1 }
 0x42b   : > { %1748 = vst [vmem:[%s3453_s13 + $0xb8] sm:$0xff] %v1703_v57  ;;  %v1707_v4 = vadd.f32 %v1706_v63, %v3445_v58 }
 0x42c   : > { %v1708_v55 = vpop.f32.mrf.mxu1 }
 0x42d   : > { %1749 = vst [vmem:[%s3453_s13 + $0xc0] sm:$0xff] %v1707_v4  ;;  %v1709_v59 = vadd.f32 %v1708_v55, %v3449_v40 }
 0x42e   : > { %v1710_v23 = vpop.f32.mrf.mxu1 }
 0x42f   : > { %1750 = vst [vmem:[%s3453_s13 + $0xc8] sm:$0xff] %v1709_v59  ;;  %v1711_v60 = vadd.f32 %v1710_v23, %v3445_v58 }
 0x430   : > { %v1712_v44 = vpop.f32.mrf.mxu1 }
 0x431   : > { %1751 = vst [vmem:[%s3453_s13 + $0xd0] sm:$0xff] %v1711_v60  ;;  %v1713_v61 = vadd.f32 %v1712_v44, %v3449_v40 }
 0x432   : > { %v1716_v28 = vpop.f32.mrf.mxu1 }
 0x433   : > { %1752 = vst [vmem:[%s3453_s13 + $0xd8] sm:$0xff] %v1713_v61  ;;  %v1717_v36 = vadd.f32 %v1716_v28, %v3445_v58 }
 0x434   : > { %v1718_v3 = vpop.f32.mrf.mxu1 }
 0x435   : > { %1753 = vst [vmem:[%s3453_s13 + $0xe0] sm:$0xff] %v1717_v36  ;;  %v1719_v48 = vadd.f32 %v1718_v3, %v3449_v40 }
 0x436   : > { %v1720_v0 = vpop.f32.mrf.mxu1 }
 0x437   : > { %1754 = vst [vmem:[%s3453_s13 + $0xe8] sm:$0xff] %v1719_v48  ;;  %v1721_v16 = vadd.f32 %v1720_v0, %v3445_v58 }
 0x438   : > { %v1722_v50 = vpop.f32.mrf.mxu1 }
 0x439   : > { %1755 = vst [vmem:[%s3453_s13 + $0xf0] sm:$0xff] %v1721_v16  ;;  %v1723_v1 = vadd.f32 %v1722_v50, %v3449_v40 }
 0x43b   : > { %1756 = vst [vmem:[%s3453_s13 + $0xf8] sm:$0xff] %v1723_v1 }
 0x43c   : > { %2614 = shalt.err (!%p2611_p4)
}
 0x43d   : > { %s2615_s3 = scalar_lea.hbm %s3523_s24, 4096  ;;  %s2619_s12 = scalar_lea.hbm %s3580_s10, 8192 }
 0x43e   : > { %p2616_p8 = scmp.ne.s32.totalorder %s3523_s24, %s2615_s3  ;;  %p2620_p10 = scmp.lt.s32.totalorder %s3523_s24, %s3580_s10 }
 0x43f   : > { %p2621_p7 = scmp.lt.s32.totalorder %s2619_s12, %s2615_s3 }
 0x440   : > { %p2617_p2 = pnand %p2616_p8, %p3607_p1 }
 0x441   : > { %p2622_p12 = por %p2621_p7, %p2620_p10 }
 0x442   : > { %p2618_p11 = pneg %p2617_p2 }
 0x444   : > { %p2623_p9 = pnand %p2622_p12, %p2618_p11 }
 0x446   : > { %2626 = shalt.err (!%p2623_p9)
}
 0x447   : > { %2184 = dma.vmem_to_hbm [thread:$0]  (%p3607_p1), %s3525_s7, 4096, %s3523_s24, %s1758_s15, %s2692_s26, %s2692_s26, %s2693_s29  }
 0x448 PF: > { %s1809_s1 = sand.u32 1, %s2665_s19   ;;  %p3608_p13 = scmp.ne.s32.totalorder %s3591_s25, 0 }
 0x449   : > { %p3609_p6 = scmp.ge.s32.totalorder %s2677_s22, 2  ;;  %s1810_s18 = scalar_lea.sflag [#allocation5], %s1809_s1 }
 0x44b   : > { %p2206_p0 = pnand %p3609_p6, %p3608_p13 }
 0x44d   : > { %p2207_p5 = pneg %p2206_p0 }
 0x44f   : > { %2656 = dma.done.wait (%p2207_p5), %s1810_s18, 4096  }
 0x450   : > { %2658 = vsyncadd (%p2207_p5), %s1810_s18, 4294963200  ;;  %s1819_s17 = scalar_lea.sflag [#allocation14], %s1809_s1 }
 0x451   : > { %2660 = dma.done.wait (%p2207_p5), %s1819_s17, 4096  }
 0x452   : > { %2662 = vsyncadd (%p2207_p5), %s1819_s17, 4294963200  ;;  %p31_p1 = scmp.ge.s32.totalorder %s2846_s14, 4   ;;  %s3610_s19 = smov %s2669_s20 }
 0x453   : > { %s3611_s20 = smov %s2673_s21  ;;  %s3612_s21 = smov %s2862_s27 }
 0x454   : > { %s3613_s22 = smov %s2846_s14  ;;  %33 = sbr.rel (!%p31_p1) target bundleno = 15 (0xf), region = 138 }
 0x459   :  { %1824 = vsyncpa [#allocation4], 1 }
 0x45a   :  { %1826 = vsyncpa [#allocation4 + $0x1], 1 }
 0x45b   :  { %1827 = vsyncpa [#allocation7], 1 }
 0x45c   :  { %1828 = vsyncpa [#allocation10], 1 }
 0x45d   :  { %1829 = vsyncpa [#allocation5], 1 }
 0x45e   :  { %1831 = vsyncpa [#allocation5 + $0x1], 1 }
 0x45f   :  { %1832 = vsyncpa [#allocation14], 1 }
 0x460   :  { %1834 = vsyncpa [#allocation14 + $0x1], 1 }

</bundles_post_ra>
